<compile_context>
chip_gen: v7x
topology: tpu7x:2x2x1
jax: 0.10.0
libtpu: 0.0.40
codegen_flags: <defaults>
</compile_context>

<pallas_src>
import jax
import jax.numpy as jnp
from jax.experimental import pallas as pl
from jax.experimental.pallas import tpu as pltpu

# ----------------------------- model dimensions ------------------------------
B, T = 2, 8          # batch, max sequence length
D_IN = 16            # d_in_{id}
H = 32               # model_dim_{id}  (GRU hidden, bidirectional -> 2H features)
D_FC = 32            # d_fc_out_{id}
N_TGT = 1            # params.n_targets


# ------------------------------ fused Pallas kernel --------------------------
def fused_submodel_kernel(x_ref, lens_ref, wcomb_ref, bi_ref,
                          whhf_ref, whhb_ref, bhnf_ref, bhnb_ref,
                          wfc1_ref, bfc1_ref, wfc2_ref, bfc2_ref,
                          o_ref, rnn_sc):
    """Everything in one kernel invocation (no grid).

    x_ref    : (T*B, D_IN)  time-major flattened input (row = t*B + b)
    lens_ref : (B, 1)       sequence lengths as float32
    wcomb    : (D_IN, 6H)   W_inp @ [Wih_r|Wih_z|Wih_n], fwd dir then bwd dir
    bi       : (1, 6H)      folded input-side biases ([b_ir+b_hr, b_iz+b_hz, b_in] x 2 dirs)
    whhf/b   : (H, 3H)      recurrent weights, gate order [r|z|n]
    bhnf/b   : (1, H)       hh-bias of the n gate (must stay inside r*(...))
    wfc1.. : OutLayer params
    o_ref    : (T*B, N_TGT) sigmoid(OutLayer(rnn_out)), time-major rows
    rnn_sc   : (T*B, 2H)    VMEM scratch holding the BiGRU output slab
    """
    lens = lens_ref[...]                                    # (B, 1)

    # (1) Hoisted fused input projection: one matmul for all T steps, both
    #     directions and all three gates.
    i_all = jnp.dot(x_ref[...], wcomb_ref[...],
                    preferred_element_type=jnp.float32) + bi_ref[...]   # (T*B, 6H)

    whh_f = whhf_ref[...]
    whh_b = whhb_ref[...]
    bhn_f = bhnf_ref[...]
    bhn_b = bhnb_ref[...]

    def gru_step(i_gates, h_prev, whh_cat, b_hn):
        # single fused (B,H) @ (H,3H) matmul on the recurrent critical path
        hg = jnp.dot(h_prev, whh_cat, preferred_element_type=jnp.float32)  # (B, 3H)
        r = jax.nn.sigmoid(i_gates[:, 0:H] + hg[:, 0:H])
        z = jax.nn.sigmoid(i_gates[:, H:2 * H] + hg[:, H:2 * H])
        n = jnp.tanh(i_gates[:, 2 * H:3 * H] + r * (hg[:, 2 * H:3 * H] + b_hn))
        return (1.0 - z) * n + z * h_prev

    hf = jnp.zeros((B, H), jnp.float32)
    hb = jnp.zeros((B, H), jnp.float32)

    # (2) T is tiny: fully unrolled static loop, no grid / pipeline overhead.
    for t in range(T):
        tb = T - 1 - t                      # backward dir walks globally-reversed time
        m_f = lens > t                      # (B, 1) bool: step t valid
        m_b = lens > tb                     # (B, 1) bool: step tb valid

        i_f = i_all[t * B:(t + 1) * B, 0:3 * H]
        i_b = i_all[tb * B:(tb + 1) * B, 3 * H:6 * H]

        hf_new = gru_step(i_f, hf, whh_f, bhn_f)
        hb_new = gru_step(i_b, hb, whh_b, bhn_b)

        # Freeze state on padded steps. For the backward direction this keeps
        # h at 0 through the leading padding of the reversed sequence, which
        # makes "global reversal + mask" identical to in-length reversal.
        hf = jnp.where(m_f, hf_new, hf)
        hb = jnp.where(m_b, hb_new, hb)

        # Padded time steps -> exact zeros (pad_packed_sequence semantics).
        # Backward output is written directly in forward time order.
        rnn_sc[t * B:(t + 1) * B, 0:H] = jnp.where(m_f, hf, 0.0)
        rnn_sc[tb * B:(tb + 1) * B, H:2 * H] = jnp.where(m_b, hb, 0.0)

    # (3) Fused OutLayer: fc1 + ReLU + fc2 + Sigmoid on the whole (T*B, 2H) slab.
    rnn = rnn_sc[...]
    h1 = jnp.dot(rnn, wfc1_ref[...], preferred_element_type=jnp.float32) + bfc1_ref[...]
    h1 = jnp.maximum(h1, 0.0)
    y = jnp.dot(h1, wfc2_ref[...], preferred_element_type=jnp.float32) + bfc2_ref[...]
    o_ref[...] = jax.nn.sigmoid(y)


# ------------------------------- forward wrapper ------------------------------
def sub_model_forward(x, x_len, fused):
    """x: (B, T, D_IN) float32, x_len: (B,) int32 -> (B, T, N_TGT)."""
    x_tm = jnp.transpose(x, (1, 0, 2)).reshape(T * B, D_IN)   # time-major rows
    lens_f = x_len.astype(jnp.float32).reshape(B, 1)

    y = pl.pallas_call(
        fused_submodel_kernel,
        out_shape=jax.ShapeDtypeStruct((T * B, N_TGT), jnp.float32),
        scratch_shapes=[pltpu.VMEM((T * B, 2 * H), jnp.float32)],
    )(x_tm, lens_f,
      fused["w_comb"], fused["b_i"],
      fused["whh_f"], fused["whh_b"], fused["bhn_f"], fused["bhn_b"],
      fused["w_fc1"], fused["b_fc1"], fused["w_fc2"], fused["b_fc2"])

    return jnp.transpose(y.reshape(T, B, N_TGT), (1, 0, 2))   # (B, T, N_TGT)

# TODO(synk): n_to_1=True path (last_item_from_packed) not implemented; it would be
# a per-batch read of rnn_sc at row (x_len[b]-1)*B+b before the OutLayer stage.


# --------------------------------- parameters ---------------------------------
def init_params(key):
    """Raw (PyTorch-layout-equivalent) parameters; gate order [r, z, n]."""
    ks = jax.random.split(key, 12)
    s = 0.1
    return {
        "w_inp": jax.random.normal(ks[0], (D_IN, H), jnp.float32) * s,   # inp Linear, bias=False
        "wih_f": jax.random.normal(ks[1], (3, H, H), jnp.float32) * s,
        "whh_f": jax.random.normal(ks[2], (3, H, H), jnp.float32) * s,
        "bih_f": jax.random.normal(ks[3], (3, 1, H), jnp.float32) * s,
        "bhh_f": jax.random.normal(ks[4], (3, 1, H), jnp.float32) * s,
        "wih_b": jax.random.normal(ks[5], (3, H, H), jnp.float32) * s,
        "whh_b": jax.random.normal(ks[6], (3, H, H), jnp.float32) * s,
        "bih_b": jax.random.normal(ks[7], (3, 1, H), jnp.float32) * s,
        "bhh_b": jax.random.normal(ks[8], (3, 1, H), jnp.float32) * s,
        "w_fc1": jax.random.normal(ks[9], (2 * H, D_FC), jnp.float32) * s,
        "b_fc1": jax.random.normal(ks[10], (1, D_FC), jnp.float32) * s,
        "w_fc2": jax.random.normal(ks[11], (D_FC, N_TGT), jnp.float32) * s,
        "b_fc2": jnp.zeros((1, N_TGT), jnp.float32),   # nn.init.constant_(fc_2.bias, 0.0)
    }


def fuse_params(p):
    """One-time weight fusion for the kernel (done outside the kernel)."""
    def cat3(w):                       # (3, A, H) -> (A, 3H), gate order [r|z|n]
        return jnp.concatenate([w[0], w[1], w[2]], axis=1)

    wih_f = cat3(p["wih_f"])
    wih_b = cat3(p["wih_b"])
    w_comb = jnp.concatenate([p["w_inp"] @ wih_f,
                              p["w_inp"] @ wih_b], axis=1)          # (D_IN, 6H)

    def folded_bias(bih, bhh):         # r/z biases fold; n's hh-bias stays separate
        return jnp.concatenate([bih[0] + bhh[0], bih[1] + bhh[1], bih[2]], axis=1)

    b_i = jnp.concatenate([folded_bias(p["bih_f"], p["bhh_f"]),
                           folded_bias(p["bih_b"], p["bhh_b"])], axis=1)  # (1, 6H)

    return {
        "w_comb": w_comb, "b_i": b_i,
        "whh_f": cat3(p["whh_f"]), "whh_b": cat3(p["whh_b"]),
        "bhn_f": p["bhh_f"][2], "bhn_b": p["bhh_b"][2],
        "w_fc1": p["w_fc1"], "b_fc1": p["b_fc1"],
        "w_fc2": p["w_fc2"], "b_fc2": p["b_fc2"],
    }


# ---------------------- pure-JAX reference (for validation) -------------------
def reference_forward(x, x_len, p):
    v = jnp.einsum("btd,dh->bth", x, p["w_inp"])

    def cell(x_t, h, wih, whh, bih, bhh):
        r = jax.nn.sigmoid(x_t @ wih[0] + bih[0] + h @ whh[0] + bhh[0])
        z = jax.nn.sigmoid(x_t @ wih[1] + bih[1] + h @ whh[1] + bhh[1])
        n = jnp.tanh(x_t @ wih[2] + bih[2] + r * (h @ whh[2] + bhh[2]))
        return (1.0 - z) * n + z * h

    out_f = [None] * T
    h = jnp.zeros((B, H), jnp.float32)
    for t in range(T):
        m = (x_len > t)[:, None]
        h = jnp.where(m, cell(v[:, t], h, p["wih_f"], p["whh_f"], p["bih_f"], p["bhh_f"]), h)
        out_f[t] = jnp.where(m, h, 0.0)

    out_b = [None] * T
    h = jnp.zeros((B, H), jnp.float32)
    for t in range(T - 1, -1, -1):
        m = (x_len > t)[:, None]
        h = jnp.where(m, cell(v[:, t], h, p["wih_b"], p["whh_b"], p["bih_b"], p["bhh_b"]), h)
        out_b[t] = jnp.where(m, h, 0.0)

    rnn = jnp.concatenate([jnp.stack(out_f, axis=1), jnp.stack(out_b, axis=1)], axis=-1)
    h1 = jnp.maximum(rnn @ p["w_fc1"] + p["b_fc1"], 0.0)
    return jax.nn.sigmoid(h1 @ p["w_fc2"] + p["b_fc2"])


# ------------------------------------ main -------------------------------------
if __name__ == "__main__":
    key = jax.random.PRNGKey(0)
    kx, kp = jax.random.split(key)
    raw = init_params(kp)
    fused = fuse_params(raw)

    x = jax.random.normal(kx, (B, T, D_IN), jnp.float32)
    x_len = jnp.array([8, 5], dtype=jnp.int32)   # variable-length sequences

    fwd = jax.jit(sub_model_forward)
    out = fwd(x, x_len, fused)
    jax.block_until_ready(out)
    assert out.shape == (B, T, N_TGT)

    ref = reference_forward(x, x_len, raw)
    max_err = float(jnp.max(jnp.abs(out - ref)))
    assert max_err < 1e-4, f"mismatch vs reference: {max_err}"

    print("KERNEL_OK")
</pallas_src>

<mosaic_0001>
module attributes {stable_mosaic.version = 11 : i64} {
  func.func @fused_submodel_kernel(%arg0: memref<16x16xf32, #tpu.memory_space<vmem>>, %arg1: memref<2x1xf32, #tpu.memory_space<vmem>>, %arg2: memref<16x192xf32, #tpu.memory_space<vmem>>, %arg3: memref<1x192xf32, #tpu.memory_space<vmem>>, %arg4: memref<32x96xf32, #tpu.memory_space<vmem>>, %arg5: memref<32x96xf32, #tpu.memory_space<vmem>>, %arg6: memref<1x32xf32, #tpu.memory_space<vmem>>, %arg7: memref<1x32xf32, #tpu.memory_space<vmem>>, %arg8: memref<64x32xf32, #tpu.memory_space<vmem>>, %arg9: memref<1x32xf32, #tpu.memory_space<vmem>>, %arg10: memref<32x1xf32, #tpu.memory_space<vmem>>, %arg11: memref<1x1xf32, #tpu.memory_space<vmem>>, %arg12: memref<16x1xf32, #tpu.memory_space<vmem>>, %arg13: memref<16x64xf32, #tpu.memory_space<vmem>>) attributes {dimension_semantics = [], scalar_prefetch = 0 : i64, scratch_operands = 1 : i64, tpu.core_type = #tpu.core_type<tc>} {
    %c0 = arith.constant 0 : index
    %c0_0 = arith.constant 0 : index
    %0 = vector.load %arg1[%c0, %c0_0] : memref<2x1xf32, #tpu.memory_space<vmem>>, vector<2x1xf32>
    %c0_1 = arith.constant 0 : index
    %c0_2 = arith.constant 0 : index
    %1 = vector.load %arg0[%c0_1, %c0_2] : memref<16x16xf32, #tpu.memory_space<vmem>>, vector<16x16xf32>
    %c0_3 = arith.constant 0 : index
    %c0_4 = arith.constant 0 : index
    %2 = vector.load %arg2[%c0_3, %c0_4] : memref<16x192xf32, #tpu.memory_space<vmem>>, vector<16x192xf32>
    %cst = arith.constant dense<0.000000e+00> : vector<16x192xf32>
    %3 = tpu.matmul %1, %2, %cst {dimension_numbers = #tpu.dot_dimension_numbers<[1], [0], [0], [1], [0, 0, 1, 1], [], []>} : vector<16x16xf32>, vector<16x192xf32>, vector<16x192xf32> -> vector<16x192xf32>
    %c0_5 = arith.constant 0 : index
    %c0_6 = arith.constant 0 : index
    %4 = vector.load %arg3[%c0_5, %c0_6] : memref<1x192xf32, #tpu.memory_space<vmem>>, vector<1x192xf32>
    %5 = vector.broadcast %4 : vector<1x192xf32> to vector<16x192xf32>
    %6 = arith.addf %3, %5 : vector<16x192xf32>
    %c0_7 = arith.constant 0 : index
    %c0_8 = arith.constant 0 : index
    %7 = vector.load %arg4[%c0_7, %c0_8] : memref<32x96xf32, #tpu.memory_space<vmem>>, vector<32x96xf32>
    %c0_9 = arith.constant 0 : index
    %c0_10 = arith.constant 0 : index
    %8 = vector.load %arg5[%c0_9, %c0_10] : memref<32x96xf32, #tpu.memory_space<vmem>>, vector<32x96xf32>
    %c0_11 = arith.constant 0 : index
    %c0_12 = arith.constant 0 : index
    %9 = vector.load %arg6[%c0_11, %c0_12] : memref<1x32xf32, #tpu.memory_space<vmem>>, vector<1x32xf32>
    %c0_13 = arith.constant 0 : index
    %c0_14 = arith.constant 0 : index
    %10 = vector.load %arg7[%c0_13, %c0_14] : memref<1x32xf32, #tpu.memory_space<vmem>>, vector<1x32xf32>
    %cst_15 = arith.constant 0.000000e+00 : f32
    %11 = vector.broadcast %cst_15 : f32 to vector<2x32xf32>
    %cst_16 = arith.constant 0.000000e+00 : f32
    %12 = vector.broadcast %cst_16 : f32 to vector<2x32xf32>
    %cst_17 = arith.constant 0.000000e+00 : f32
    %13 = vector.broadcast %cst_17 : f32 to vector<2x1xf32>
    %14 = arith.cmpf ogt, %0, %13 : vector<2x1xf32>
    %cst_18 = arith.constant 7.000000e+00 : f32
    %15 = vector.broadcast %cst_18 : f32 to vector<2x1xf32>
    %16 = arith.cmpf ogt, %0, %15 : vector<2x1xf32>
    %17 = vector.extract_strided_slice %6 {offsets = [0, 0], sizes = [2, 96], strides = [1, 1]} : vector<16x192xf32> to vector<2x96xf32>
    %18 = vector.extract_strided_slice %6 {offsets = [14, 96], sizes = [2, 96], strides = [1, 1]} : vector<16x192xf32> to vector<2x96xf32>
    %cst_19 = arith.constant dense<0.000000e+00> : vector<2x96xf32>
    %19 = tpu.matmul %11, %7, %cst_19 {dimension_numbers = #tpu.dot_dimension_numbers<[1], [0], [0], [1], [0, 0, 1, 1], [], []>} : vector<2x32xf32>, vector<32x96xf32>, vector<2x96xf32> -> vector<2x96xf32>
    %20 = vector.extract_strided_slice %17 {offsets = [0, 0], sizes = [2, 32], strides = [1, 1]} : vector<2x96xf32> to vector<2x32xf32>
    %21 = vector.extract_strided_slice %19 {offsets = [0, 0], sizes = [2, 32], strides = [1, 1]} : vector<2x96xf32> to vector<2x32xf32>
    %22 = arith.addf %20, %21 : vector<2x32xf32>
    %23 = arith.negf %22 : vector<2x32xf32>
    %24 = math.exp %23 : vector<2x32xf32>
    %cst_20 = arith.constant 1.000000e+00 : f32
    %25 = vector.broadcast %cst_20 : f32 to vector<2x32xf32>
    %26 = arith.addf %25, %24 : vector<2x32xf32>
    %27 = arith.divf %25, %26 : vector<2x32xf32>
    %28 = vector.extract_strided_slice %17 {offsets = [0, 32], sizes = [2, 32], strides = [1, 1]} : vector<2x96xf32> to vector<2x32xf32>
    %29 = vector.extract_strided_slice %19 {offsets = [0, 32], sizes = [2, 32], strides = [1, 1]} : vector<2x96xf32> to vector<2x32xf32>
    %30 = arith.addf %28, %29 : vector<2x32xf32>
    %31 = arith.negf %30 : vector<2x32xf32>
    %32 = math.exp %31 : vector<2x32xf32>
    %cst_21 = arith.constant 1.000000e+00 : f32
    %33 = vector.broadcast %cst_21 : f32 to vector<2x32xf32>
    %34 = arith.addf %33, %32 : vector<2x32xf32>
    %35 = arith.divf %33, %34 : vector<2x32xf32>
    %36 = vector.extract_strided_slice %17 {offsets = [0, 64], sizes = [2, 32], strides = [1, 1]} : vector<2x96xf32> to vector<2x32xf32>
    %37 = vector.extract_strided_slice %19 {offsets = [0, 64], sizes = [2, 32], strides = [1, 1]} : vector<2x96xf32> to vector<2x32xf32>
    %38 = vector.broadcast %9 : vector<1x32xf32> to vector<2x32xf32>
    %39 = arith.addf %37, %38 : vector<2x32xf32>
    %40 = arith.mulf %27, %39 : vector<2x32xf32>
    %41 = arith.addf %36, %40 : vector<2x32xf32>
    %42 = math.tanh %41 : vector<2x32xf32>
    %cst_22 = arith.constant 1.000000e+00 : f32
    %43 = vector.broadcast %cst_22 : f32 to vector<2x32xf32>
    %44 = arith.subf %43, %35 : vector<2x32xf32>
    %45 = arith.mulf %44, %42 : vector<2x32xf32>
    %46 = arith.mulf %35, %11 : vector<2x32xf32>
    %47 = arith.addf %45, %46 : vector<2x32xf32>
    %cst_23 = arith.constant dense<0.000000e+00> : vector<2x96xf32>
    %48 = tpu.matmul %12, %8, %cst_23 {dimension_numbers = #tpu.dot_dimension_numbers<[1], [0], [0], [1], [0, 0, 1, 1], [], []>} : vector<2x32xf32>, vector<32x96xf32>, vector<2x96xf32> -> vector<2x96xf32>
    %49 = vector.extract_strided_slice %18 {offsets = [0, 0], sizes = [2, 32], strides = [1, 1]} : vector<2x96xf32> to vector<2x32xf32>
    %50 = vector.extract_strided_slice %48 {offsets = [0, 0], sizes = [2, 32], strides = [1, 1]} : vector<2x96xf32> to vector<2x32xf32>
    %51 = arith.addf %49, %50 : vector<2x32xf32>
    %52 = arith.negf %51 : vector<2x32xf32>
    %53 = math.exp %52 : vector<2x32xf32>
    %cst_24 = arith.constant 1.000000e+00 : f32
    %54 = vector.broadcast %cst_24 : f32 to vector<2x32xf32>
    %55 = arith.addf %54, %53 : vector<2x32xf32>
    %56 = arith.divf %54, %55 : vector<2x32xf32>
    %57 = vector.extract_strided_slice %18 {offsets = [0, 32], sizes = [2, 32], strides = [1, 1]} : vector<2x96xf32> to vector<2x32xf32>
    %58 = vector.extract_strided_slice %48 {offsets = [0, 32], sizes = [2, 32], strides = [1, 1]} : vector<2x96xf32> to vector<2x32xf32>
    %59 = arith.addf %57, %58 : vector<2x32xf32>
    %60 = arith.negf %59 : vector<2x32xf32>
    %61 = math.exp %60 : vector<2x32xf32>
    %cst_25 = arith.constant 1.000000e+00 : f32
    %62 = vector.broadcast %cst_25 : f32 to vector<2x32xf32>
    %63 = arith.addf %62, %61 : vector<2x32xf32>
    %64 = arith.divf %62, %63 : vector<2x32xf32>
    %65 = vector.extract_strided_slice %18 {offsets = [0, 64], sizes = [2, 32], strides = [1, 1]} : vector<2x96xf32> to vector<2x32xf32>
    %66 = vector.extract_strided_slice %48 {offsets = [0, 64], sizes = [2, 32], strides = [1, 1]} : vector<2x96xf32> to vector<2x32xf32>
    %67 = vector.broadcast %10 : vector<1x32xf32> to vector<2x32xf32>
    %68 = arith.addf %66, %67 : vector<2x32xf32>
    %69 = arith.mulf %56, %68 : vector<2x32xf32>
    %70 = arith.addf %65, %69 : vector<2x32xf32>
    %71 = math.tanh %70 : vector<2x32xf32>
    %cst_26 = arith.constant 1.000000e+00 : f32
    %72 = vector.broadcast %cst_26 : f32 to vector<2x32xf32>
    %73 = arith.subf %72, %64 : vector<2x32xf32>
    %74 = arith.mulf %73, %71 : vector<2x32xf32>
    %75 = arith.mulf %64, %12 : vector<2x32xf32>
    %76 = arith.addf %74, %75 : vector<2x32xf32>
    %77 = vector.shape_cast %14 : vector<2x1xi1> to vector<2x1xi1>
    %78 = vector.broadcast %77 : vector<2x1xi1> to vector<2x32xi1>
    %79 = arith.select %78, %47, %11 : vector<2x32xi1>, vector<2x32xf32>
    %80 = vector.shape_cast %16 : vector<2x1xi1> to vector<2x1xi1>
    %81 = vector.broadcast %80 : vector<2x1xi1> to vector<2x32xi1>
    %82 = arith.select %81, %76, %12 : vector<2x32xi1>, vector<2x32xf32>
    %cst_27 = arith.constant 0.000000e+00 : f32
    %83 = vector.shape_cast %14 : vector<2x1xi1> to vector<2x1xi1>
    %84 = vector.broadcast %83 : vector<2x1xi1> to vector<2x32xi1>
    %85 = vector.broadcast %cst_27 : f32 to vector<2x32xf32>
    %86 = arith.select %84, %79, %85 : vector<2x32xi1>, vector<2x32xf32>
    %c0_28 = arith.constant 0 : index
    %c0_29 = arith.constant 0 : index
    %87 = vector.load %arg13[%c0_28, %c0_29] : memref<16x64xf32, #tpu.memory_space<vmem>>, vector<2x32xf32>
    tpu.vector_store %arg13[%c0_28, %c0_29], %86 {strides = array<i32>} : memref<16x64xf32, #tpu.memory_space<vmem>>, vector<2x32xf32>,
    %cst_30 = arith.constant 0.000000e+00 : f32
    %88 = vector.shape_cast %16 : vector<2x1xi1> to vector<2x1xi1>
    %89 = vector.broadcast %88 : vector<2x1xi1> to vector<2x32xi1>
    %90 = vector.broadcast %cst_30 : f32 to vector<2x32xf32>
    %91 = arith.select %89, %82, %90 : vector<2x32xi1>, vector<2x32xf32>
    %c14 = arith.constant 14 : index
    %c32 = arith.constant 32 : index
    %92 = vector.load %arg13[%c14, %c32] : memref<16x64xf32, #tpu.memory_space<vmem>>, vector<2x32xf32>
    tpu.vector_store %arg13[%c14, %c32], %91 {strides = array<i32>} : memref<16x64xf32, #tpu.memory_space<vmem>>, vector<2x32xf32>,
    %cst_31 = arith.constant 1.000000e+00 : f32
    %93 = vector.broadcast %cst_31 : f32 to vector<2x1xf32>
    %94 = arith.cmpf ogt, %0, %93 : vector<2x1xf32>
    %cst_32 = arith.constant 6.000000e+00 : f32
    %95 = vector.broadcast %cst_32 : f32 to vector<2x1xf32>
    %96 = arith.cmpf ogt, %0, %95 : vector<2x1xf32>
    %97 = vector.extract_strided_slice %6 {offsets = [2, 0], sizes = [2, 96], strides = [1, 1]} : vector<16x192xf32> to vector<2x96xf32>
    %98 = vector.extract_strided_slice %6 {offsets = [12, 96], sizes = [2, 96], strides = [1, 1]} : vector<16x192xf32> to vector<2x96xf32>
    %cst_33 = arith.constant dense<0.000000e+00> : vector<2x96xf32>
    %99 = tpu.matmul %79, %7, %cst_33 {dimension_numbers = #tpu.dot_dimension_numbers<[1], [0], [0], [1], [0, 0, 1, 1], [], []>} : vector<2x32xf32>, vector<32x96xf32>, vector<2x96xf32> -> vector<2x96xf32>
    %100 = vector.extract_strided_slice %97 {offsets = [0, 0], sizes = [2, 32], strides = [1, 1]} : vector<2x96xf32> to vector<2x32xf32>
    %101 = vector.extract_strided_slice %99 {offsets = [0, 0], sizes = [2, 32], strides = [1, 1]} : vector<2x96xf32> to vector<2x32xf32>
    %102 = arith.addf %100, %101 : vector<2x32xf32>
    %103 = arith.negf %102 : vector<2x32xf32>
    %104 = math.exp %103 : vector<2x32xf32>
    %cst_34 = arith.constant 1.000000e+00 : f32
    %105 = vector.broadcast %cst_34 : f32 to vector<2x32xf32>
    %106 = arith.addf %105, %104 : vector<2x32xf32>
    %107 = arith.divf %105, %106 : vector<2x32xf32>
    %108 = vector.extract_strided_slice %97 {offsets = [0, 32], sizes = [2, 32], strides = [1, 1]} : vector<2x96xf32> to vector<2x32xf32>
    %109 = vector.extract_strided_slice %99 {offsets = [0, 32], sizes = [2, 32], strides = [1, 1]} : vector<2x96xf32> to vector<2x32xf32>
    %110 = arith.addf %108, %109 : vector<2x32xf32>
    %111 = arith.negf %110 : vector<2x32xf32>
    %112 = math.exp %111 : vector<2x32xf32>
    %cst_35 = arith.constant 1.000000e+00 : f32
    %113 = vector.broadcast %cst_35 : f32 to vector<2x32xf32>
    %114 = arith.addf %113, %112 : vector<2x32xf32>
    %115 = arith.divf %113, %114 : vector<2x32xf32>
    %116 = vector.extract_strided_slice %97 {offsets = [0, 64], sizes = [2, 32], strides = [1, 1]} : vector<2x96xf32> to vector<2x32xf32>
    %117 = vector.extract_strided_slice %99 {offsets = [0, 64], sizes = [2, 32], strides = [1, 1]} : vector<2x96xf32> to vector<2x32xf32>
    %118 = vector.broadcast %9 : vector<1x32xf32> to vector<2x32xf32>
    %119 = arith.addf %117, %118 : vector<2x32xf32>
    %120 = arith.mulf %107, %119 : vector<2x32xf32>
    %121 = arith.addf %116, %120 : vector<2x32xf32>
    %122 = math.tanh %121 : vector<2x32xf32>
    %cst_36 = arith.constant 1.000000e+00 : f32
    %123 = vector.broadcast %cst_36 : f32 to vector<2x32xf32>
    %124 = arith.subf %123, %115 : vector<2x32xf32>
    %125 = arith.mulf %124, %122 : vector<2x32xf32>
    %126 = arith.mulf %115, %79 : vector<2x32xf32>
    %127 = arith.addf %125, %126 : vector<2x32xf32>
    %cst_37 = arith.constant dense<0.000000e+00> : vector<2x96xf32>
    %128 = tpu.matmul %82, %8, %cst_37 {dimension_numbers = #tpu.dot_dimension_numbers<[1], [0], [0], [1], [0, 0, 1, 1], [], []>} : vector<2x32xf32>, vector<32x96xf32>, vector<2x96xf32> -> vector<2x96xf32>
    %129 = vector.extract_strided_slice %98 {offsets = [0, 0], sizes = [2, 32], strides = [1, 1]} : vector<2x96xf32> to vector<2x32xf32>
    %130 = vector.extract_strided_slice %128 {offsets = [0, 0], sizes = [2, 32], strides = [1, 1]} : vector<2x96xf32> to vector<2x32xf32>
    %131 = arith.addf %129, %130 : vector<2x32xf32>
    %132 = arith.negf %131 : vector<2x32xf32>
    %133 = math.exp %132 : vector<2x32xf32>
    %cst_38 = arith.constant 1.000000e+00 : f32
    %134 = vector.broadcast %cst_38 : f32 to vector<2x32xf32>
    %135 = arith.addf %134, %133 : vector<2x32xf32>
    %136 = arith.divf %134, %135 : vector<2x32xf32>
    %137 = vector.extract_strided_slice %98 {offsets = [0, 32], sizes = [2, 32], strides = [1, 1]} : vector<2x96xf32> to vector<2x32xf32>
    %138 = vector.extract_strided_slice %128 {offsets = [0, 32], sizes = [2, 32], strides = [1, 1]} : vector<2x96xf32> to vector<2x32xf32>
    %139 = arith.addf %137, %138 : vector<2x32xf32>
    %140 = arith.negf %139 : vector<2x32xf32>
    %141 = math.exp %140 : vector<2x32xf32>
    %cst_39 = arith.constant 1.000000e+00 : f32
    %142 = vector.broadcast %cst_39 : f32 to vector<2x32xf32>
    %143 = arith.addf %142, %141 : vector<2x32xf32>
    %144 = arith.divf %142, %143 : vector<2x32xf32>
    %145 = vector.extract_strided_slice %98 {offsets = [0, 64], sizes = [2, 32], strides = [1, 1]} : vector<2x96xf32> to vector<2x32xf32>
    %146 = vector.extract_strided_slice %128 {offsets = [0, 64], sizes = [2, 32], strides = [1, 1]} : vector<2x96xf32> to vector<2x32xf32>
    %147 = vector.broadcast %10 : vector<1x32xf32> to vector<2x32xf32>
    %148 = arith.addf %146, %147 : vector<2x32xf32>
    %149 = arith.mulf %136, %148 : vector<2x32xf32>
    %150 = arith.addf %145, %149 : vector<2x32xf32>
    %151 = math.tanh %150 : vector<2x32xf32>
    %cst_40 = arith.constant 1.000000e+00 : f32
    %152 = vector.broadcast %cst_40 : f32 to vector<2x32xf32>
    %153 = arith.subf %152, %144 : vector<2x32xf32>
    %154 = arith.mulf %153, %151 : vector<2x32xf32>
    %155 = arith.mulf %144, %82 : vector<2x32xf32>
    %156 = arith.addf %154, %155 : vector<2x32xf32>
    %157 = vector.shape_cast %94 : vector<2x1xi1> to vector<2x1xi1>
    %158 = vector.broadcast %157 : vector<2x1xi1> to vector<2x32xi1>
    %159 = arith.select %158, %127, %79 : vector<2x32xi1>, vector<2x32xf32>
    %160 = vector.shape_cast %96 : vector<2x1xi1> to vector<2x1xi1>
    %161 = vector.broadcast %160 : vector<2x1xi1> to vector<2x32xi1>
    %162 = arith.select %161, %156, %82 : vector<2x32xi1>, vector<2x32xf32>
    %cst_41 = arith.constant 0.000000e+00 : f32
    %163 = vector.shape_cast %94 : vector<2x1xi1> to vector<2x1xi1>
    %164 = vector.broadcast %163 : vector<2x1xi1> to vector<2x32xi1>
    %165 = vector.broadcast %cst_41 : f32 to vector<2x32xf32>
    %166 = arith.select %164, %159, %165 : vector<2x32xi1>, vector<2x32xf32>
    %c2 = arith.constant 2 : index
    %c0_42 = arith.constant 0 : index
    %167 = vector.load %arg13[%c2, %c0_42] : memref<16x64xf32, #tpu.memory_space<vmem>>, vector<2x32xf32>
    tpu.vector_store %arg13[%c2, %c0_42], %166 {strides = array<i32>} : memref<16x64xf32, #tpu.memory_space<vmem>>, vector<2x32xf32>,
    %cst_43 = arith.constant 0.000000e+00 : f32
    %168 = vector.shape_cast %96 : vector<2x1xi1> to vector<2x1xi1>
    %169 = vector.broadcast %168 : vector<2x1xi1> to vector<2x32xi1>
    %170 = vector.broadcast %cst_43 : f32 to vector<2x32xf32>
    %171 = arith.select %169, %162, %170 : vector<2x32xi1>, vector<2x32xf32>
    %c12 = arith.constant 12 : index
    %c32_44 = arith.constant 32 : index
    %172 = vector.load %arg13[%c12, %c32_44] : memref<16x64xf32, #tpu.memory_space<vmem>>, vector<2x32xf32>
    tpu.vector_store %arg13[%c12, %c32_44], %171 {strides = array<i32>} : memref<16x64xf32, #tpu.memory_space<vmem>>, vector<2x32xf32>,
    %cst_45 = arith.constant 2.000000e+00 : f32
    %173 = vector.broadcast %cst_45 : f32 to vector<2x1xf32>
    %174 = arith.cmpf ogt, %0, %173 : vector<2x1xf32>
    %cst_46 = arith.constant 5.000000e+00 : f32
    %175 = vector.broadcast %cst_46 : f32 to vector<2x1xf32>
    %176 = arith.cmpf ogt, %0, %175 : vector<2x1xf32>
    %177 = vector.extract_strided_slice %6 {offsets = [4, 0], sizes = [2, 96], strides = [1, 1]} : vector<16x192xf32> to vector<2x96xf32>
    %178 = vector.extract_strided_slice %6 {offsets = [10, 96], sizes = [2, 96], strides = [1, 1]} : vector<16x192xf32> to vector<2x96xf32>
    %cst_47 = arith.constant dense<0.000000e+00> : vector<2x96xf32>
    %179 = tpu.matmul %159, %7, %cst_47 {dimension_numbers = #tpu.dot_dimension_numbers<[1], [0], [0], [1], [0, 0, 1, 1], [], []>} : vector<2x32xf32>, vector<32x96xf32>, vector<2x96xf32> -> vector<2x96xf32>
    %180 = vector.extract_strided_slice %177 {offsets = [0, 0], sizes = [2, 32], strides = [1, 1]} : vector<2x96xf32> to vector<2x32xf32>
    %181 = vector.extract_strided_slice %179 {offsets = [0, 0], sizes = [2, 32], strides = [1, 1]} : vector<2x96xf32> to vector<2x32xf32>
    %182 = arith.addf %180, %181 : vector<2x32xf32>
    %183 = arith.negf %182 : vector<2x32xf32>
    %184 = math.exp %183 : vector<2x32xf32>
    %cst_48 = arith.constant 1.000000e+00 : f32
    %185 = vector.broadcast %cst_48 : f32 to vector<2x32xf32>
    %186 = arith.addf %185, %184 : vector<2x32xf32>
    %187 = arith.divf %185, %186 : vector<2x32xf32>
    %188 = vector.extract_strided_slice %177 {offsets = [0, 32], sizes = [2, 32], strides = [1, 1]} : vector<2x96xf32> to vector<2x32xf32>
    %189 = vector.extract_strided_slice %179 {offsets = [0, 32], sizes = [2, 32], strides = [1, 1]} : vector<2x96xf32> to vector<2x32xf32>
    %190 = arith.addf %188, %189 : vector<2x32xf32>
    %191 = arith.negf %190 : vector<2x32xf32>
    %192 = math.exp %191 : vector<2x32xf32>
    %cst_49 = arith.constant 1.000000e+00 : f32
    %193 = vector.broadcast %cst_49 : f32 to vector<2x32xf32>
    %194 = arith.addf %193, %192 : vector<2x32xf32>
    %195 = arith.divf %193, %194 : vector<2x32xf32>
    %196 = vector.extract_strided_slice %177 {offsets = [0, 64], sizes = [2, 32], strides = [1, 1]} : vector<2x96xf32> to vector<2x32xf32>
    %197 = vector.extract_strided_slice %179 {offsets = [0, 64], sizes = [2, 32], strides = [1, 1]} : vector<2x96xf32> to vector<2x32xf32>
    %198 = vector.broadcast %9 : vector<1x32xf32> to vector<2x32xf32>
    %199 = arith.addf %197, %198 : vector<2x32xf32>
    %200 = arith.mulf %187, %199 : vector<2x32xf32>
    %201 = arith.addf %196, %200 : vector<2x32xf32>
    %202 = math.tanh %201 : vector<2x32xf32>
    %cst_50 = arith.constant 1.000000e+00 : f32
    %203 = vector.broadcast %cst_50 : f32 to vector<2x32xf32>
    %204 = arith.subf %203, %195 : vector<2x32xf32>
    %205 = arith.mulf %204, %202 : vector<2x32xf32>
    %206 = arith.mulf %195, %159 : vector<2x32xf32>
    %207 = arith.addf %205, %206 : vector<2x32xf32>
    %cst_51 = arith.constant dense<0.000000e+00> : vector<2x96xf32>
    %208 = tpu.matmul %162, %8, %cst_51 {dimension_numbers = #tpu.dot_dimension_numbers<[1], [0], [0], [1], [0, 0, 1, 1], [], []>} : vector<2x32xf32>, vector<32x96xf32>, vector<2x96xf32> -> vector<2x96xf32>
    %209 = vector.extract_strided_slice %178 {offsets = [0, 0], sizes = [2, 32], strides = [1, 1]} : vector<2x96xf32> to vector<2x32xf32>
    %210 = vector.extract_strided_slice %208 {offsets = [0, 0], sizes = [2, 32], strides = [1, 1]} : vector<2x96xf32> to vector<2x32xf32>
    %211 = arith.addf %209, %210 : vector<2x32xf32>
    %212 = arith.negf %211 : vector<2x32xf32>
    %213 = math.exp %212 : vector<2x32xf32>
    %cst_52 = arith.constant 1.000000e+00 : f32
    %214 = vector.broadcast %cst_52 : f32 to vector<2x32xf32>
    %215 = arith.addf %214, %213 : vector<2x32xf32>
    %216 = arith.divf %214, %215 : vector<2x32xf32>
    %217 = vector.extract_strided_slice %178 {offsets = [0, 32], sizes = [2, 32], strides = [1, 1]} : vector<2x96xf32> to vector<2x32xf32>
    %218 = vector.extract_strided_slice %208 {offsets = [0, 32], sizes = [2, 32], strides = [1, 1]} : vector<2x96xf32> to vector<2x32xf32>
    %219 = arith.addf %217, %218 : vector<2x32xf32>
    %220 = arith.negf %219 : vector<2x32xf32>
    %221 = math.exp %220 : vector<2x32xf32>
    %cst_53 = arith.constant 1.000000e+00 : f32
    %222 = vector.broadcast %cst_53 : f32 to vector<2x32xf32>
    %223 = arith.addf %222, %221 : vector<2x32xf32>
    %224 = arith.divf %222, %223 : vector<2x32xf32>
    %225 = vector.extract_strided_slice %178 {offsets = [0, 64], sizes = [2, 32], strides = [1, 1]} : vector<2x96xf32> to vector<2x32xf32>
    %226 = vector.extract_strided_slice %208 {offsets = [0, 64], sizes = [2, 32], strides = [1, 1]} : vector<2x96xf32> to vector<2x32xf32>
    %227 = vector.broadcast %10 : vector<1x32xf32> to vector<2x32xf32>
    %228 = arith.addf %226, %227 : vector<2x32xf32>
    %229 = arith.mulf %216, %228 : vector<2x32xf32>
    %230 = arith.addf %225, %229 : vector<2x32xf32>
    %231 = math.tanh %230 : vector<2x32xf32>
    %cst_54 = arith.constant 1.000000e+00 : f32
    %232 = vector.broadcast %cst_54 : f32 to vector<2x32xf32>
    %233 = arith.subf %232, %224 : vector<2x32xf32>
    %234 = arith.mulf %233, %231 : vector<2x32xf32>
    %235 = arith.mulf %224, %162 : vector<2x32xf32>
    %236 = arith.addf %234, %235 : vector<2x32xf32>
    %237 = vector.shape_cast %174 : vector<2x1xi1> to vector<2x1xi1>
    %238 = vector.broadcast %237 : vector<2x1xi1> to vector<2x32xi1>
    %239 = arith.select %238, %207, %159 : vector<2x32xi1>, vector<2x32xf32>
    %240 = vector.shape_cast %176 : vector<2x1xi1> to vector<2x1xi1>
    %241 = vector.broadcast %240 : vector<2x1xi1> to vector<2x32xi1>
    %242 = arith.select %241, %236, %162 : vector<2x32xi1>, vector<2x32xf32>
    %cst_55 = arith.constant 0.000000e+00 : f32
    %243 = vector.shape_cast %174 : vector<2x1xi1> to vector<2x1xi1>
    %244 = vector.broadcast %243 : vector<2x1xi1> to vector<2x32xi1>
    %245 = vector.broadcast %cst_55 : f32 to vector<2x32xf32>
    %246 = arith.select %244, %239, %245 : vector<2x32xi1>, vector<2x32xf32>
    %c4 = arith.constant 4 : index
    %c0_56 = arith.constant 0 : index
    %247 = vector.load %arg13[%c4, %c0_56] : memref<16x64xf32, #tpu.memory_space<vmem>>, vector<2x32xf32>
    tpu.vector_store %arg13[%c4, %c0_56], %246 {strides = array<i32>} : memref<16x64xf32, #tpu.memory_space<vmem>>, vector<2x32xf32>,
    %cst_57 = arith.constant 0.000000e+00 : f32
    %248 = vector.shape_cast %176 : vector<2x1xi1> to vector<2x1xi1>
    %249 = vector.broadcast %248 : vector<2x1xi1> to vector<2x32xi1>
    %250 = vector.broadcast %cst_57 : f32 to vector<2x32xf32>
    %251 = arith.select %249, %242, %250 : vector<2x32xi1>, vector<2x32xf32>
    %c10 = arith.constant 10 : index
    %c32_58 = arith.constant 32 : index
    %252 = vector.load %arg13[%c10, %c32_58] : memref<16x64xf32, #tpu.memory_space<vmem>>, vector<2x32xf32>
    tpu.vector_store %arg13[%c10, %c32_58], %251 {strides = array<i32>} : memref<16x64xf32, #tpu.memory_space<vmem>>, vector<2x32xf32>,
    %cst_59 = arith.constant 3.000000e+00 : f32
    %253 = vector.broadcast %cst_59 : f32 to vector<2x1xf32>
    %254 = arith.cmpf ogt, %0, %253 : vector<2x1xf32>
    %cst_60 = arith.constant 4.000000e+00 : f32
    %255 = vector.broadcast %cst_60 : f32 to vector<2x1xf32>
    %256 = arith.cmpf ogt, %0, %255 : vector<2x1xf32>
    %257 = vector.extract_strided_slice %6 {offsets = [6, 0], sizes = [2, 96], strides = [1, 1]} : vector<16x192xf32> to vector<2x96xf32>
    %258 = vector.extract_strided_slice %6 {offsets = [8, 96], sizes = [2, 96], strides = [1, 1]} : vector<16x192xf32> to vector<2x96xf32>
    %cst_61 = arith.constant dense<0.000000e+00> : vector<2x96xf32>
    %259 = tpu.matmul %239, %7, %cst_61 {dimension_numbers = #tpu.dot_dimension_numbers<[1], [0], [0], [1], [0, 0, 1, 1], [], []>} : vector<2x32xf32>, vector<32x96xf32>, vector<2x96xf32> -> vector<2x96xf32>
    %260 = vector.extract_strided_slice %257 {offsets = [0, 0], sizes = [2, 32], strides = [1, 1]} : vector<2x96xf32> to vector<2x32xf32>
    %261 = vector.extract_strided_slice %259 {offsets = [0, 0], sizes = [2, 32], strides = [1, 1]} : vector<2x96xf32> to vector<2x32xf32>
    %262 = arith.addf %260, %261 : vector<2x32xf32>
    %263 = arith.negf %262 : vector<2x32xf32>
    %264 = math.exp %263 : vector<2x32xf32>
    %cst_62 = arith.constant 1.000000e+00 : f32
    %265 = vector.broadcast %cst_62 : f32 to vector<2x32xf32>
    %266 = arith.addf %265, %264 : vector<2x32xf32>
    %267 = arith.divf %265, %266 : vector<2x32xf32>
    %268 = vector.extract_strided_slice %257 {offsets = [0, 32], sizes = [2, 32], strides = [1, 1]} : vector<2x96xf32> to vector<2x32xf32>
    %269 = vector.extract_strided_slice %259 {offsets = [0, 32], sizes = [2, 32], strides = [1, 1]} : vector<2x96xf32> to vector<2x32xf32>
    %270 = arith.addf %268, %269 : vector<2x32xf32>
    %271 = arith.negf %270 : vector<2x32xf32>
    %272 = math.exp %271 : vector<2x32xf32>
    %cst_63 = arith.constant 1.000000e+00 : f32
    %273 = vector.broadcast %cst_63 : f32 to vector<2x32xf32>
    %274 = arith.addf %273, %272 : vector<2x32xf32>
    %275 = arith.divf %273, %274 : vector<2x32xf32>
    %276 = vector.extract_strided_slice %257 {offsets = [0, 64], sizes = [2, 32], strides = [1, 1]} : vector<2x96xf32> to vector<2x32xf32>
    %277 = vector.extract_strided_slice %259 {offsets = [0, 64], sizes = [2, 32], strides = [1, 1]} : vector<2x96xf32> to vector<2x32xf32>
    %278 = vector.broadcast %9 : vector<1x32xf32> to vector<2x32xf32>
    %279 = arith.addf %277, %278 : vector<2x32xf32>
    %280 = arith.mulf %267, %279 : vector<2x32xf32>
    %281 = arith.addf %276, %280 : vector<2x32xf32>
    %282 = math.tanh %281 : vector<2x32xf32>
    %cst_64 = arith.constant 1.000000e+00 : f32
    %283 = vector.broadcast %cst_64 : f32 to vector<2x32xf32>
    %284 = arith.subf %283, %275 : vector<2x32xf32>
    %285 = arith.mulf %284, %282 : vector<2x32xf32>
    %286 = arith.mulf %275, %239 : vector<2x32xf32>
    %287 = arith.addf %285, %286 : vector<2x32xf32>
    %cst_65 = arith.constant dense<0.000000e+00> : vector<2x96xf32>
    %288 = tpu.matmul %242, %8, %cst_65 {dimension_numbers = #tpu.dot_dimension_numbers<[1], [0], [0], [1], [0, 0, 1, 1], [], []>} : vector<2x32xf32>, vector<32x96xf32>, vector<2x96xf32> -> vector<2x96xf32>
    %289 = vector.extract_strided_slice %258 {offsets = [0, 0], sizes = [2, 32], strides = [1, 1]} : vector<2x96xf32> to vector<2x32xf32>
    %290 = vector.extract_strided_slice %288 {offsets = [0, 0], sizes = [2, 32], strides = [1, 1]} : vector<2x96xf32> to vector<2x32xf32>
    %291 = arith.addf %289, %290 : vector<2x32xf32>
    %292 = arith.negf %291 : vector<2x32xf32>
    %293 = math.exp %292 : vector<2x32xf32>
    %cst_66 = arith.constant 1.000000e+00 : f32
    %294 = vector.broadcast %cst_66 : f32 to vector<2x32xf32>
    %295 = arith.addf %294, %293 : vector<2x32xf32>
    %296 = arith.divf %294, %295 : vector<2x32xf32>
    %297 = vector.extract_strided_slice %258 {offsets = [0, 32], sizes = [2, 32], strides = [1, 1]} : vector<2x96xf32> to vector<2x32xf32>
    %298 = vector.extract_strided_slice %288 {offsets = [0, 32], sizes = [2, 32], strides = [1, 1]} : vector<2x96xf32> to vector<2x32xf32>
    %299 = arith.addf %297, %298 : vector<2x32xf32>
    %300 = arith.negf %299 : vector<2x32xf32>
    %301 = math.exp %300 : vector<2x32xf32>
    %cst_67 = arith.constant 1.000000e+00 : f32
    %302 = vector.broadcast %cst_67 : f32 to vector<2x32xf32>
    %303 = arith.addf %302, %301 : vector<2x32xf32>
    %304 = arith.divf %302, %303 : vector<2x32xf32>
    %305 = vector.extract_strided_slice %258 {offsets = [0, 64], sizes = [2, 32], strides = [1, 1]} : vector<2x96xf32> to vector<2x32xf32>
    %306 = vector.extract_strided_slice %288 {offsets = [0, 64], sizes = [2, 32], strides = [1, 1]} : vector<2x96xf32> to vector<2x32xf32>
    %307 = vector.broadcast %10 : vector<1x32xf32> to vector<2x32xf32>
    %308 = arith.addf %306, %307 : vector<2x32xf32>
    %309 = arith.mulf %296, %308 : vector<2x32xf32>
    %310 = arith.addf %305, %309 : vector<2x32xf32>
    %311 = math.tanh %310 : vector<2x32xf32>
    %cst_68 = arith.constant 1.000000e+00 : f32
    %312 = vector.broadcast %cst_68 : f32 to vector<2x32xf32>
    %313 = arith.subf %312, %304 : vector<2x32xf32>
    %314 = arith.mulf %313, %311 : vector<2x32xf32>
    %315 = arith.mulf %304, %242 : vector<2x32xf32>
    %316 = arith.addf %314, %315 : vector<2x32xf32>
    %317 = vector.shape_cast %254 : vector<2x1xi1> to vector<2x1xi1>
    %318 = vector.broadcast %317 : vector<2x1xi1> to vector<2x32xi1>
    %319 = arith.select %318, %287, %239 : vector<2x32xi1>, vector<2x32xf32>
    %320 = vector.shape_cast %256 : vector<2x1xi1> to vector<2x1xi1>
    %321 = vector.broadcast %320 : vector<2x1xi1> to vector<2x32xi1>
    %322 = arith.select %321, %316, %242 : vector<2x32xi1>, vector<2x32xf32>
    %cst_69 = arith.constant 0.000000e+00 : f32
    %323 = vector.shape_cast %254 : vector<2x1xi1> to vector<2x1xi1>
    %324 = vector.broadcast %323 : vector<2x1xi1> to vector<2x32xi1>
    %325 = vector.broadcast %cst_69 : f32 to vector<2x32xf32>
    %326 = arith.select %324, %319, %325 : vector<2x32xi1>, vector<2x32xf32>
    %c6 = arith.constant 6 : index
    %c0_70 = arith.constant 0 : index
    %327 = vector.load %arg13[%c6, %c0_70] : memref<16x64xf32, #tpu.memory_space<vmem>>, vector<2x32xf32>
    tpu.vector_store %arg13[%c6, %c0_70], %326 {strides = array<i32>} : memref<16x64xf32, #tpu.memory_space<vmem>>, vector<2x32xf32>,
    %cst_71 = arith.constant 0.000000e+00 : f32
    %328 = vector.shape_cast %256 : vector<2x1xi1> to vector<2x1xi1>
    %329 = vector.broadcast %328 : vector<2x1xi1> to vector<2x32xi1>
    %330 = vector.broadcast %cst_71 : f32 to vector<2x32xf32>
    %331 = arith.select %329, %322, %330 : vector<2x32xi1>, vector<2x32xf32>
    %c8 = arith.constant 8 : index
    %c32_72 = arith.constant 32 : index
    %332 = vector.load %arg13[%c8, %c32_72] : memref<16x64xf32, #tpu.memory_space<vmem>>, vector<2x32xf32>
    tpu.vector_store %arg13[%c8, %c32_72], %331 {strides = array<i32>} : memref<16x64xf32, #tpu.memory_space<vmem>>, vector<2x32xf32>,
    %cst_73 = arith.constant 4.000000e+00 : f32
    %333 = vector.broadcast %cst_73 : f32 to vector<2x1xf32>
    %334 = arith.cmpf ogt, %0, %333 : vector<2x1xf32>
    %cst_74 = arith.constant 3.000000e+00 : f32
    %335 = vector.broadcast %cst_74 : f32 to vector<2x1xf32>
    %336 = arith.cmpf ogt, %0, %335 : vector<2x1xf32>
    %337 = vector.extract_strided_slice %6 {offsets = [8, 0], sizes = [2, 96], strides = [1, 1]} : vector<16x192xf32> to vector<2x96xf32>
    %338 = vector.extract_strided_slice %6 {offsets = [6, 96], sizes = [2, 96], strides = [1, 1]} : vector<16x192xf32> to vector<2x96xf32>
    %cst_75 = arith.constant dense<0.000000e+00> : vector<2x96xf32>
    %339 = tpu.matmul %319, %7, %cst_75 {dimension_numbers = #tpu.dot_dimension_numbers<[1], [0], [0], [1], [0, 0, 1, 1], [], []>} : vector<2x32xf32>, vector<32x96xf32>, vector<2x96xf32> -> vector<2x96xf32>
    %340 = vector.extract_strided_slice %337 {offsets = [0, 0], sizes = [2, 32], strides = [1, 1]} : vector<2x96xf32> to vector<2x32xf32>
    %341 = vector.extract_strided_slice %339 {offsets = [0, 0], sizes = [2, 32], strides = [1, 1]} : vector<2x96xf32> to vector<2x32xf32>
    %342 = arith.addf %340, %341 : vector<2x32xf32>
    %343 = arith.negf %342 : vector<2x32xf32>
    %344 = math.exp %343 : vector<2x32xf32>
    %cst_76 = arith.constant 1.000000e+00 : f32
    %345 = vector.broadcast %cst_76 : f32 to vector<2x32xf32>
    %346 = arith.addf %345, %344 : vector<2x32xf32>
    %347 = arith.divf %345, %346 : vector<2x32xf32>
    %348 = vector.extract_strided_slice %337 {offsets = [0, 32], sizes = [2, 32], strides = [1, 1]} : vector<2x96xf32> to vector<2x32xf32>
    %349 = vector.extract_strided_slice %339 {offsets = [0, 32], sizes = [2, 32], strides = [1, 1]} : vector<2x96xf32> to vector<2x32xf32>
    %350 = arith.addf %348, %349 : vector<2x32xf32>
    %351 = arith.negf %350 : vector<2x32xf32>
    %352 = math.exp %351 : vector<2x32xf32>
    %cst_77 = arith.constant 1.000000e+00 : f32
    %353 = vector.broadcast %cst_77 : f32 to vector<2x32xf32>
    %354 = arith.addf %353, %352 : vector<2x32xf32>
    %355 = arith.divf %353, %354 : vector<2x32xf32>
    %356 = vector.extract_strided_slice %337 {offsets = [0, 64], sizes = [2, 32], strides = [1, 1]} : vector<2x96xf32> to vector<2x32xf32>
    %357 = vector.extract_strided_slice %339 {offsets = [0, 64], sizes = [2, 32], strides = [1, 1]} : vector<2x96xf32> to vector<2x32xf32>
    %358 = vector.broadcast %9 : vector<1x32xf32> to vector<2x32xf32>
    %359 = arith.addf %357, %358 : vector<2x32xf32>
    %360 = arith.mulf %347, %359 : vector<2x32xf32>
    %361 = arith.addf %356, %360 : vector<2x32xf32>
    %362 = math.tanh %361 : vector<2x32xf32>
    %cst_78 = arith.constant 1.000000e+00 : f32
    %363 = vector.broadcast %cst_78 : f32 to vector<2x32xf32>
    %364 = arith.subf %363, %355 : vector<2x32xf32>
    %365 = arith.mulf %364, %362 : vector<2x32xf32>
    %366 = arith.mulf %355, %319 : vector<2x32xf32>
    %367 = arith.addf %365, %366 : vector<2x32xf32>
    %cst_79 = arith.constant dense<0.000000e+00> : vector<2x96xf32>
    %368 = tpu.matmul %322, %8, %cst_79 {dimension_numbers = #tpu.dot_dimension_numbers<[1], [0], [0], [1], [0, 0, 1, 1], [], []>} : vector<2x32xf32>, vector<32x96xf32>, vector<2x96xf32> -> vector<2x96xf32>
    %369 = vector.extract_strided_slice %338 {offsets = [0, 0], sizes = [2, 32], strides = [1, 1]} : vector<2x96xf32> to vector<2x32xf32>
    %370 = vector.extract_strided_slice %368 {offsets = [0, 0], sizes = [2, 32], strides = [1, 1]} : vector<2x96xf32> to vector<2x32xf32>
    %371 = arith.addf %369, %370 : vector<2x32xf32>
    %372 = arith.negf %371 : vector<2x32xf32>
    %373 = math.exp %372 : vector<2x32xf32>
    %cst_80 = arith.constant 1.000000e+00 : f32
    %374 = vector.broadcast %cst_80 : f32 to vector<2x32xf32>
    %375 = arith.addf %374, %373 : vector<2x32xf32>
    %376 = arith.divf %374, %375 : vector<2x32xf32>
    %377 = vector.extract_strided_slice %338 {offsets = [0, 32], sizes = [2, 32], strides = [1, 1]} : vector<2x96xf32> to vector<2x32xf32>
    %378 = vector.extract_strided_slice %368 {offsets = [0, 32], sizes = [2, 32], strides = [1, 1]} : vector<2x96xf32> to vector<2x32xf32>
    %379 = arith.addf %377, %378 : vector<2x32xf32>
    %380 = arith.negf %379 : vector<2x32xf32>
    %381 = math.exp %380 : vector<2x32xf32>
    %cst_81 = arith.constant 1.000000e+00 : f32
    %382 = vector.broadcast %cst_81 : f32 to vector<2x32xf32>
    %383 = arith.addf %382, %381 : vector<2x32xf32>
    %384 = arith.divf %382, %383 : vector<2x32xf32>
    %385 = vector.extract_strided_slice %338 {offsets = [0, 64], sizes = [2, 32], strides = [1, 1]} : vector<2x96xf32> to vector<2x32xf32>
    %386 = vector.extract_strided_slice %368 {offsets = [0, 64], sizes = [2, 32], strides = [1, 1]} : vector<2x96xf32> to vector<2x32xf32>
    %387 = vector.broadcast %10 : vector<1x32xf32> to vector<2x32xf32>
    %388 = arith.addf %386, %387 : vector<2x32xf32>
    %389 = arith.mulf %376, %388 : vector<2x32xf32>
    %390 = arith.addf %385, %389 : vector<2x32xf32>
    %391 = math.tanh %390 : vector<2x32xf32>
    %cst_82 = arith.constant 1.000000e+00 : f32
    %392 = vector.broadcast %cst_82 : f32 to vector<2x32xf32>
    %393 = arith.subf %392, %384 : vector<2x32xf32>
    %394 = arith.mulf %393, %391 : vector<2x32xf32>
    %395 = arith.mulf %384, %322 : vector<2x32xf32>
    %396 = arith.addf %394, %395 : vector<2x32xf32>
    %397 = vector.shape_cast %334 : vector<2x1xi1> to vector<2x1xi1>
    %398 = vector.broadcast %397 : vector<2x1xi1> to vector<2x32xi1>
    %399 = arith.select %398, %367, %319 : vector<2x32xi1>, vector<2x32xf32>
    %400 = vector.shape_cast %336 : vector<2x1xi1> to vector<2x1xi1>
    %401 = vector.broadcast %400 : vector<2x1xi1> to vector<2x32xi1>
    %402 = arith.select %401, %396, %322 : vector<2x32xi1>, vector<2x32xf32>
    %cst_83 = arith.constant 0.000000e+00 : f32
    %403 = vector.shape_cast %334 : vector<2x1xi1> to vector<2x1xi1>
    %404 = vector.broadcast %403 : vector<2x1xi1> to vector<2x32xi1>
    %405 = vector.broadcast %cst_83 : f32 to vector<2x32xf32>
    %406 = arith.select %404, %399, %405 : vector<2x32xi1>, vector<2x32xf32>
    %c8_84 = arith.constant 8 : index
    %c0_85 = arith.constant 0 : index
    %407 = vector.load %arg13[%c8_84, %c0_85] : memref<16x64xf32, #tpu.memory_space<vmem>>, vector<2x32xf32>
    tpu.vector_store %arg13[%c8_84, %c0_85], %406 {strides = array<i32>} : memref<16x64xf32, #tpu.memory_space<vmem>>, vector<2x32xf32>,
    %cst_86 = arith.constant 0.000000e+00 : f32
    %408 = vector.shape_cast %336 : vector<2x1xi1> to vector<2x1xi1>
    %409 = vector.broadcast %408 : vector<2x1xi1> to vector<2x32xi1>
    %410 = vector.broadcast %cst_86 : f32 to vector<2x32xf32>
    %411 = arith.select %409, %402, %410 : vector<2x32xi1>, vector<2x32xf32>
    %c6_87 = arith.constant 6 : index
    %c32_88 = arith.constant 32 : index
    %412 = vector.load %arg13[%c6_87, %c32_88] : memref<16x64xf32, #tpu.memory_space<vmem>>, vector<2x32xf32>
    tpu.vector_store %arg13[%c6_87, %c32_88], %411 {strides = array<i32>} : memref<16x64xf32, #tpu.memory_space<vmem>>, vector<2x32xf32>,
    %cst_89 = arith.constant 5.000000e+00 : f32
    %413 = vector.broadcast %cst_89 : f32 to vector<2x1xf32>
    %414 = arith.cmpf ogt, %0, %413 : vector<2x1xf32>
    %cst_90 = arith.constant 2.000000e+00 : f32
    %415 = vector.broadcast %cst_90 : f32 to vector<2x1xf32>
    %416 = arith.cmpf ogt, %0, %415 : vector<2x1xf32>
    %417 = vector.extract_strided_slice %6 {offsets = [10, 0], sizes = [2, 96], strides = [1, 1]} : vector<16x192xf32> to vector<2x96xf32>
    %418 = vector.extract_strided_slice %6 {offsets = [4, 96], sizes = [2, 96], strides = [1, 1]} : vector<16x192xf32> to vector<2x96xf32>
    %cst_91 = arith.constant dense<0.000000e+00> : vector<2x96xf32>
    %419 = tpu.matmul %399, %7, %cst_91 {dimension_numbers = #tpu.dot_dimension_numbers<[1], [0], [0], [1], [0, 0, 1, 1], [], []>} : vector<2x32xf32>, vector<32x96xf32>, vector<2x96xf32> -> vector<2x96xf32>
    %420 = vector.extract_strided_slice %417 {offsets = [0, 0], sizes = [2, 32], strides = [1, 1]} : vector<2x96xf32> to vector<2x32xf32>
    %421 = vector.extract_strided_slice %419 {offsets = [0, 0], sizes = [2, 32], strides = [1, 1]} : vector<2x96xf32> to vector<2x32xf32>
    %422 = arith.addf %420, %421 : vector<2x32xf32>
    %423 = arith.negf %422 : vector<2x32xf32>
    %424 = math.exp %423 : vector<2x32xf32>
    %cst_92 = arith.constant 1.000000e+00 : f32
    %425 = vector.broadcast %cst_92 : f32 to vector<2x32xf32>
    %426 = arith.addf %425, %424 : vector<2x32xf32>
    %427 = arith.divf %425, %426 : vector<2x32xf32>
    %428 = vector.extract_strided_slice %417 {offsets = [0, 32], sizes = [2, 32], strides = [1, 1]} : vector<2x96xf32> to vector<2x32xf32>
    %429 = vector.extract_strided_slice %419 {offsets = [0, 32], sizes = [2, 32], strides = [1, 1]} : vector<2x96xf32> to vector<2x32xf32>
    %430 = arith.addf %428, %429 : vector<2x32xf32>
    %431 = arith.negf %430 : vector<2x32xf32>
    %432 = math.exp %431 : vector<2x32xf32>
    %cst_93 = arith.constant 1.000000e+00 : f32
    %433 = vector.broadcast %cst_93 : f32 to vector<2x32xf32>
    %434 = arith.addf %433, %432 : vector<2x32xf32>
    %435 = arith.divf %433, %434 : vector<2x32xf32>
    %436 = vector.extract_strided_slice %417 {offsets = [0, 64], sizes = [2, 32], strides = [1, 1]} : vector<2x96xf32> to vector<2x32xf32>
    %437 = vector.extract_strided_slice %419 {offsets = [0, 64], sizes = [2, 32], strides = [1, 1]} : vector<2x96xf32> to vector<2x32xf32>
    %438 = vector.broadcast %9 : vector<1x32xf32> to vector<2x32xf32>
    %439 = arith.addf %437, %438 : vector<2x32xf32>
    %440 = arith.mulf %427, %439 : vector<2x32xf32>
    %441 = arith.addf %436, %440 : vector<2x32xf32>
    %442 = math.tanh %441 : vector<2x32xf32>
    %cst_94 = arith.constant 1.000000e+00 : f32
    %443 = vector.broadcast %cst_94 : f32 to vector<2x32xf32>
    %444 = arith.subf %443, %435 : vector<2x32xf32>
    %445 = arith.mulf %444, %442 : vector<2x32xf32>
    %446 = arith.mulf %435, %399 : vector<2x32xf32>
    %447 = arith.addf %445, %446 : vector<2x32xf32>
    %cst_95 = arith.constant dense<0.000000e+00> : vector<2x96xf32>
    %448 = tpu.matmul %402, %8, %cst_95 {dimension_numbers = #tpu.dot_dimension_numbers<[1], [0], [0], [1], [0, 0, 1, 1], [], []>} : vector<2x32xf32>, vector<32x96xf32>, vector<2x96xf32> -> vector<2x96xf32>
    %449 = vector.extract_strided_slice %418 {offsets = [0, 0], sizes = [2, 32], strides = [1, 1]} : vector<2x96xf32> to vector<2x32xf32>
    %450 = vector.extract_strided_slice %448 {offsets = [0, 0], sizes = [2, 32], strides = [1, 1]} : vector<2x96xf32> to vector<2x32xf32>
    %451 = arith.addf %449, %450 : vector<2x32xf32>
    %452 = arith.negf %451 : vector<2x32xf32>
    %453 = math.exp %452 : vector<2x32xf32>
    %cst_96 = arith.constant 1.000000e+00 : f32
    %454 = vector.broadcast %cst_96 : f32 to vector<2x32xf32>
    %455 = arith.addf %454, %453 : vector<2x32xf32>
    %456 = arith.divf %454, %455 : vector<2x32xf32>
    %457 = vector.extract_strided_slice %418 {offsets = [0, 32], sizes = [2, 32], strides = [1, 1]} : vector<2x96xf32> to vector<2x32xf32>
    %458 = vector.extract_strided_slice %448 {offsets = [0, 32], sizes = [2, 32], strides = [1, 1]} : vector<2x96xf32> to vector<2x32xf32>
    %459 = arith.addf %457, %458 : vector<2x32xf32>
    %460 = arith.negf %459 : vector<2x32xf32>
    %461 = math.exp %460 : vector<2x32xf32>
    %cst_97 = arith.constant 1.000000e+00 : f32
    %462 = vector.broadcast %cst_97 : f32 to vector<2x32xf32>
    %463 = arith.addf %462, %461 : vector<2x32xf32>
    %464 = arith.divf %462, %463 : vector<2x32xf32>
    %465 = vector.extract_strided_slice %418 {offsets = [0, 64], sizes = [2, 32], strides = [1, 1]} : vector<2x96xf32> to vector<2x32xf32>
    %466 = vector.extract_strided_slice %448 {offsets = [0, 64], sizes = [2, 32], strides = [1, 1]} : vector<2x96xf32> to vector<2x32xf32>
    %467 = vector.broadcast %10 : vector<1x32xf32> to vector<2x32xf32>
    %468 = arith.addf %466, %467 : vector<2x32xf32>
    %469 = arith.mulf %456, %468 : vector<2x32xf32>
    %470 = arith.addf %465, %469 : vector<2x32xf32>
    %471 = math.tanh %470 : vector<2x32xf32>
    %cst_98 = arith.constant 1.000000e+00 : f32
    %472 = vector.broadcast %cst_98 : f32 to vector<2x32xf32>
    %473 = arith.subf %472, %464 : vector<2x32xf32>
    %474 = arith.mulf %473, %471 : vector<2x32xf32>
    %475 = arith.mulf %464, %402 : vector<2x32xf32>
    %476 = arith.addf %474, %475 : vector<2x32xf32>
    %477 = vector.shape_cast %414 : vector<2x1xi1> to vector<2x1xi1>
    %478 = vector.broadcast %477 : vector<2x1xi1> to vector<2x32xi1>
    %479 = arith.select %478, %447, %399 : vector<2x32xi1>, vector<2x32xf32>
    %480 = vector.shape_cast %416 : vector<2x1xi1> to vector<2x1xi1>
    %481 = vector.broadcast %480 : vector<2x1xi1> to vector<2x32xi1>
    %482 = arith.select %481, %476, %402 : vector<2x32xi1>, vector<2x32xf32>
    %cst_99 = arith.constant 0.000000e+00 : f32
    %483 = vector.shape_cast %414 : vector<2x1xi1> to vector<2x1xi1>
    %484 = vector.broadcast %483 : vector<2x1xi1> to vector<2x32xi1>
    %485 = vector.broadcast %cst_99 : f32 to vector<2x32xf32>
    %486 = arith.select %484, %479, %485 : vector<2x32xi1>, vector<2x32xf32>
    %c10_100 = arith.constant 10 : index
    %c0_101 = arith.constant 0 : index
    %487 = vector.load %arg13[%c10_100, %c0_101] : memref<16x64xf32, #tpu.memory_space<vmem>>, vector<2x32xf32>
    tpu.vector_store %arg13[%c10_100, %c0_101], %486 {strides = array<i32>} : memref<16x64xf32, #tpu.memory_space<vmem>>, vector<2x32xf32>,
    %cst_102 = arith.constant 0.000000e+00 : f32
    %488 = vector.shape_cast %416 : vector<2x1xi1> to vector<2x1xi1>
    %489 = vector.broadcast %488 : vector<2x1xi1> to vector<2x32xi1>
    %490 = vector.broadcast %cst_102 : f32 to vector<2x32xf32>
    %491 = arith.select %489, %482, %490 : vector<2x32xi1>, vector<2x32xf32>
    %c4_103 = arith.constant 4 : index
    %c32_104 = arith.constant 32 : index
    %492 = vector.load %arg13[%c4_103, %c32_104] : memref<16x64xf32, #tpu.memory_space<vmem>>, vector<2x32xf32>
    tpu.vector_store %arg13[%c4_103, %c32_104], %491 {strides = array<i32>} : memref<16x64xf32, #tpu.memory_space<vmem>>, vector<2x32xf32>,
    %cst_105 = arith.constant 6.000000e+00 : f32
    %493 = vector.broadcast %cst_105 : f32 to vector<2x1xf32>
    %494 = arith.cmpf ogt, %0, %493 : vector<2x1xf32>
    %cst_106 = arith.constant 1.000000e+00 : f32
    %495 = vector.broadcast %cst_106 : f32 to vector<2x1xf32>
    %496 = arith.cmpf ogt, %0, %495 : vector<2x1xf32>
    %497 = vector.extract_strided_slice %6 {offsets = [12, 0], sizes = [2, 96], strides = [1, 1]} : vector<16x192xf32> to vector<2x96xf32>
    %498 = vector.extract_strided_slice %6 {offsets = [2, 96], sizes = [2, 96], strides = [1, 1]} : vector<16x192xf32> to vector<2x96xf32>
    %cst_107 = arith.constant dense<0.000000e+00> : vector<2x96xf32>
    %499 = tpu.matmul %479, %7, %cst_107 {dimension_numbers = #tpu.dot_dimension_numbers<[1], [0], [0], [1], [0, 0, 1, 1], [], []>} : vector<2x32xf32>, vector<32x96xf32>, vector<2x96xf32> -> vector<2x96xf32>
    %500 = vector.extract_strided_slice %497 {offsets = [0, 0], sizes = [2, 32], strides = [1, 1]} : vector<2x96xf32> to vector<2x32xf32>
    %501 = vector.extract_strided_slice %499 {offsets = [0, 0], sizes = [2, 32], strides = [1, 1]} : vector<2x96xf32> to vector<2x32xf32>
    %502 = arith.addf %500, %501 : vector<2x32xf32>
    %503 = arith.negf %502 : vector<2x32xf32>
    %504 = math.exp %503 : vector<2x32xf32>
    %cst_108 = arith.constant 1.000000e+00 : f32
    %505 = vector.broadcast %cst_108 : f32 to vector<2x32xf32>
    %506 = arith.addf %505, %504 : vector<2x32xf32>
    %507 = arith.divf %505, %506 : vector<2x32xf32>
    %508 = vector.extract_strided_slice %497 {offsets = [0, 32], sizes = [2, 32], strides = [1, 1]} : vector<2x96xf32> to vector<2x32xf32>
    %509 = vector.extract_strided_slice %499 {offsets = [0, 32], sizes = [2, 32], strides = [1, 1]} : vector<2x96xf32> to vector<2x32xf32>
    %510 = arith.addf %508, %509 : vector<2x32xf32>
    %511 = arith.negf %510 : vector<2x32xf32>
    %512 = math.exp %511 : vector<2x32xf32>
    %cst_109 = arith.constant 1.000000e+00 : f32
    %513 = vector.broadcast %cst_109 : f32 to vector<2x32xf32>
    %514 = arith.addf %513, %512 : vector<2x32xf32>
    %515 = arith.divf %513, %514 : vector<2x32xf32>
    %516 = vector.extract_strided_slice %497 {offsets = [0, 64], sizes = [2, 32], strides = [1, 1]} : vector<2x96xf32> to vector<2x32xf32>
    %517 = vector.extract_strided_slice %499 {offsets = [0, 64], sizes = [2, 32], strides = [1, 1]} : vector<2x96xf32> to vector<2x32xf32>
    %518 = vector.broadcast %9 : vector<1x32xf32> to vector<2x32xf32>
    %519 = arith.addf %517, %518 : vector<2x32xf32>
    %520 = arith.mulf %507, %519 : vector<2x32xf32>
    %521 = arith.addf %516, %520 : vector<2x32xf32>
    %522 = math.tanh %521 : vector<2x32xf32>
    %cst_110 = arith.constant 1.000000e+00 : f32
    %523 = vector.broadcast %cst_110 : f32 to vector<2x32xf32>
    %524 = arith.subf %523, %515 : vector<2x32xf32>
    %525 = arith.mulf %524, %522 : vector<2x32xf32>
    %526 = arith.mulf %515, %479 : vector<2x32xf32>
    %527 = arith.addf %525, %526 : vector<2x32xf32>
    %cst_111 = arith.constant dense<0.000000e+00> : vector<2x96xf32>
    %528 = tpu.matmul %482, %8, %cst_111 {dimension_numbers = #tpu.dot_dimension_numbers<[1], [0], [0], [1], [0, 0, 1, 1], [], []>} : vector<2x32xf32>, vector<32x96xf32>, vector<2x96xf32> -> vector<2x96xf32>
    %529 = vector.extract_strided_slice %498 {offsets = [0, 0], sizes = [2, 32], strides = [1, 1]} : vector<2x96xf32> to vector<2x32xf32>
    %530 = vector.extract_strided_slice %528 {offsets = [0, 0], sizes = [2, 32], strides = [1, 1]} : vector<2x96xf32> to vector<2x32xf32>
    %531 = arith.addf %529, %530 : vector<2x32xf32>
    %532 = arith.negf %531 : vector<2x32xf32>
    %533 = math.exp %532 : vector<2x32xf32>
    %cst_112 = arith.constant 1.000000e+00 : f32
    %534 = vector.broadcast %cst_112 : f32 to vector<2x32xf32>
    %535 = arith.addf %534, %533 : vector<2x32xf32>
    %536 = arith.divf %534, %535 : vector<2x32xf32>
    %537 = vector.extract_strided_slice %498 {offsets = [0, 32], sizes = [2, 32], strides = [1, 1]} : vector<2x96xf32> to vector<2x32xf32>
    %538 = vector.extract_strided_slice %528 {offsets = [0, 32], sizes = [2, 32], strides = [1, 1]} : vector<2x96xf32> to vector<2x32xf32>
    %539 = arith.addf %537, %538 : vector<2x32xf32>
    %540 = arith.negf %539 : vector<2x32xf32>
    %541 = math.exp %540 : vector<2x32xf32>
    %cst_113 = arith.constant 1.000000e+00 : f32
    %542 = vector.broadcast %cst_113 : f32 to vector<2x32xf32>
    %543 = arith.addf %542, %541 : vector<2x32xf32>
    %544 = arith.divf %542, %543 : vector<2x32xf32>
    %545 = vector.extract_strided_slice %498 {offsets = [0, 64], sizes = [2, 32], strides = [1, 1]} : vector<2x96xf32> to vector<2x32xf32>
    %546 = vector.extract_strided_slice %528 {offsets = [0, 64], sizes = [2, 32], strides = [1, 1]} : vector<2x96xf32> to vector<2x32xf32>
    %547 = vector.broadcast %10 : vector<1x32xf32> to vector<2x32xf32>
    %548 = arith.addf %546, %547 : vector<2x32xf32>
    %549 = arith.mulf %536, %548 : vector<2x32xf32>
    %550 = arith.addf %545, %549 : vector<2x32xf32>
    %551 = math.tanh %550 : vector<2x32xf32>
    %cst_114 = arith.constant 1.000000e+00 : f32
    %552 = vector.broadcast %cst_114 : f32 to vector<2x32xf32>
    %553 = arith.subf %552, %544 : vector<2x32xf32>
    %554 = arith.mulf %553, %551 : vector<2x32xf32>
    %555 = arith.mulf %544, %482 : vector<2x32xf32>
    %556 = arith.addf %554, %555 : vector<2x32xf32>
    %557 = vector.shape_cast %494 : vector<2x1xi1> to vector<2x1xi1>
    %558 = vector.broadcast %557 : vector<2x1xi1> to vector<2x32xi1>
    %559 = arith.select %558, %527, %479 : vector<2x32xi1>, vector<2x32xf32>
    %560 = vector.shape_cast %496 : vector<2x1xi1> to vector<2x1xi1>
    %561 = vector.broadcast %560 : vector<2x1xi1> to vector<2x32xi1>
    %562 = arith.select %561, %556, %482 : vector<2x32xi1>, vector<2x32xf32>
    %cst_115 = arith.constant 0.000000e+00 : f32
    %563 = vector.shape_cast %494 : vector<2x1xi1> to vector<2x1xi1>
    %564 = vector.broadcast %563 : vector<2x1xi1> to vector<2x32xi1>
    %565 = vector.broadcast %cst_115 : f32 to vector<2x32xf32>
    %566 = arith.select %564, %559, %565 : vector<2x32xi1>, vector<2x32xf32>
    %c12_116 = arith.constant 12 : index
    %c0_117 = arith.constant 0 : index
    %567 = vector.load %arg13[%c12_116, %c0_117] : memref<16x64xf32, #tpu.memory_space<vmem>>, vector<2x32xf32>
    tpu.vector_store %arg13[%c12_116, %c0_117], %566 {strides = array<i32>} : memref<16x64xf32, #tpu.memory_space<vmem>>, vector<2x32xf32>,
    %cst_118 = arith.constant 0.000000e+00 : f32
    %568 = vector.shape_cast %496 : vector<2x1xi1> to vector<2x1xi1>
    %569 = vector.broadcast %568 : vector<2x1xi1> to vector<2x32xi1>
    %570 = vector.broadcast %cst_118 : f32 to vector<2x32xf32>
    %571 = arith.select %569, %562, %570 : vector<2x32xi1>, vector<2x32xf32>
    %c2_119 = arith.constant 2 : index
    %c32_120 = arith.constant 32 : index
    %572 = vector.load %arg13[%c2_119, %c32_120] : memref<16x64xf32, #tpu.memory_space<vmem>>, vector<2x32xf32>
    tpu.vector_store %arg13[%c2_119, %c32_120], %571 {strides = array<i32>} : memref<16x64xf32, #tpu.memory_space<vmem>>, vector<2x32xf32>,
    %cst_121 = arith.constant 7.000000e+00 : f32
    %573 = vector.broadcast %cst_121 : f32 to vector<2x1xf32>
    %574 = arith.cmpf ogt, %0, %573 : vector<2x1xf32>
    %cst_122 = arith.constant 0.000000e+00 : f32
    %575 = vector.broadcast %cst_122 : f32 to vector<2x1xf32>
    %576 = arith.cmpf ogt, %0, %575 : vector<2x1xf32>
    %577 = vector.extract_strided_slice %6 {offsets = [14, 0], sizes = [2, 96], strides = [1, 1]} : vector<16x192xf32> to vector<2x96xf32>
    %578 = vector.extract_strided_slice %6 {offsets = [0, 96], sizes = [2, 96], strides = [1, 1]} : vector<16x192xf32> to vector<2x96xf32>
    %cst_123 = arith.constant dense<0.000000e+00> : vector<2x96xf32>
    %579 = tpu.matmul %559, %7, %cst_123 {dimension_numbers = #tpu.dot_dimension_numbers<[1], [0], [0], [1], [0, 0, 1, 1], [], []>} : vector<2x32xf32>, vector<32x96xf32>, vector<2x96xf32> -> vector<2x96xf32>
    %580 = vector.extract_strided_slice %577 {offsets = [0, 0], sizes = [2, 32], strides = [1, 1]} : vector<2x96xf32> to vector<2x32xf32>
    %581 = vector.extract_strided_slice %579 {offsets = [0, 0], sizes = [2, 32], strides = [1, 1]} : vector<2x96xf32> to vector<2x32xf32>
    %582 = arith.addf %580, %581 : vector<2x32xf32>
    %583 = arith.negf %582 : vector<2x32xf32>
    %584 = math.exp %583 : vector<2x32xf32>
    %cst_124 = arith.constant 1.000000e+00 : f32
    %585 = vector.broadcast %cst_124 : f32 to vector<2x32xf32>
    %586 = arith.addf %585, %584 : vector<2x32xf32>
    %587 = arith.divf %585, %586 : vector<2x32xf32>
    %588 = vector.extract_strided_slice %577 {offsets = [0, 32], sizes = [2, 32], strides = [1, 1]} : vector<2x96xf32> to vector<2x32xf32>
    %589 = vector.extract_strided_slice %579 {offsets = [0, 32], sizes = [2, 32], strides = [1, 1]} : vector<2x96xf32> to vector<2x32xf32>
    %590 = arith.addf %588, %589 : vector<2x32xf32>
    %591 = arith.negf %590 : vector<2x32xf32>
    %592 = math.exp %591 : vector<2x32xf32>
    %cst_125 = arith.constant 1.000000e+00 : f32
    %593 = vector.broadcast %cst_125 : f32 to vector<2x32xf32>
    %594 = arith.addf %593, %592 : vector<2x32xf32>
    %595 = arith.divf %593, %594 : vector<2x32xf32>
    %596 = vector.extract_strided_slice %577 {offsets = [0, 64], sizes = [2, 32], strides = [1, 1]} : vector<2x96xf32> to vector<2x32xf32>
    %597 = vector.extract_strided_slice %579 {offsets = [0, 64], sizes = [2, 32], strides = [1, 1]} : vector<2x96xf32> to vector<2x32xf32>
    %598 = vector.broadcast %9 : vector<1x32xf32> to vector<2x32xf32>
    %599 = arith.addf %597, %598 : vector<2x32xf32>
    %600 = arith.mulf %587, %599 : vector<2x32xf32>
    %601 = arith.addf %596, %600 : vector<2x32xf32>
    %602 = math.tanh %601 : vector<2x32xf32>
    %cst_126 = arith.constant 1.000000e+00 : f32
    %603 = vector.broadcast %cst_126 : f32 to vector<2x32xf32>
    %604 = arith.subf %603, %595 : vector<2x32xf32>
    %605 = arith.mulf %604, %602 : vector<2x32xf32>
    %606 = arith.mulf %595, %559 : vector<2x32xf32>
    %607 = arith.addf %605, %606 : vector<2x32xf32>
    %cst_127 = arith.constant dense<0.000000e+00> : vector<2x96xf32>
    %608 = tpu.matmul %562, %8, %cst_127 {dimension_numbers = #tpu.dot_dimension_numbers<[1], [0], [0], [1], [0, 0, 1, 1], [], []>} : vector<2x32xf32>, vector<32x96xf32>, vector<2x96xf32> -> vector<2x96xf32>
    %609 = vector.extract_strided_slice %578 {offsets = [0, 0], sizes = [2, 32], strides = [1, 1]} : vector<2x96xf32> to vector<2x32xf32>
    %610 = vector.extract_strided_slice %608 {offsets = [0, 0], sizes = [2, 32], strides = [1, 1]} : vector<2x96xf32> to vector<2x32xf32>
    %611 = arith.addf %609, %610 : vector<2x32xf32>
    %612 = arith.negf %611 : vector<2x32xf32>
    %613 = math.exp %612 : vector<2x32xf32>
    %cst_128 = arith.constant 1.000000e+00 : f32
    %614 = vector.broadcast %cst_128 : f32 to vector<2x32xf32>
    %615 = arith.addf %614, %613 : vector<2x32xf32>
    %616 = arith.divf %614, %615 : vector<2x32xf32>
    %617 = vector.extract_strided_slice %578 {offsets = [0, 32], sizes = [2, 32], strides = [1, 1]} : vector<2x96xf32> to vector<2x32xf32>
    %618 = vector.extract_strided_slice %608 {offsets = [0, 32], sizes = [2, 32], strides = [1, 1]} : vector<2x96xf32> to vector<2x32xf32>
    %619 = arith.addf %617, %618 : vector<2x32xf32>
    %620 = arith.negf %619 : vector<2x32xf32>
    %621 = math.exp %620 : vector<2x32xf32>
    %cst_129 = arith.constant 1.000000e+00 : f32
    %622 = vector.broadcast %cst_129 : f32 to vector<2x32xf32>
    %623 = arith.addf %622, %621 : vector<2x32xf32>
    %624 = arith.divf %622, %623 : vector<2x32xf32>
    %625 = vector.extract_strided_slice %578 {offsets = [0, 64], sizes = [2, 32], strides = [1, 1]} : vector<2x96xf32> to vector<2x32xf32>
    %626 = vector.extract_strided_slice %608 {offsets = [0, 64], sizes = [2, 32], strides = [1, 1]} : vector<2x96xf32> to vector<2x32xf32>
    %627 = vector.broadcast %10 : vector<1x32xf32> to vector<2x32xf32>
    %628 = arith.addf %626, %627 : vector<2x32xf32>
    %629 = arith.mulf %616, %628 : vector<2x32xf32>
    %630 = arith.addf %625, %629 : vector<2x32xf32>
    %631 = math.tanh %630 : vector<2x32xf32>
    %cst_130 = arith.constant 1.000000e+00 : f32
    %632 = vector.broadcast %cst_130 : f32 to vector<2x32xf32>
    %633 = arith.subf %632, %624 : vector<2x32xf32>
    %634 = arith.mulf %633, %631 : vector<2x32xf32>
    %635 = arith.mulf %624, %562 : vector<2x32xf32>
    %636 = arith.addf %634, %635 : vector<2x32xf32>
    %637 = vector.shape_cast %574 : vector<2x1xi1> to vector<2x1xi1>
    %638 = vector.broadcast %637 : vector<2x1xi1> to vector<2x32xi1>
    %639 = arith.select %638, %607, %559 : vector<2x32xi1>, vector<2x32xf32>
    %640 = vector.shape_cast %576 : vector<2x1xi1> to vector<2x1xi1>
    %641 = vector.broadcast %640 : vector<2x1xi1> to vector<2x32xi1>
    %642 = arith.select %641, %636, %562 : vector<2x32xi1>, vector<2x32xf32>
    %cst_131 = arith.constant 0.000000e+00 : f32
    %643 = vector.shape_cast %574 : vector<2x1xi1> to vector<2x1xi1>
    %644 = vector.broadcast %643 : vector<2x1xi1> to vector<2x32xi1>
    %645 = vector.broadcast %cst_131 : f32 to vector<2x32xf32>
    %646 = arith.select %644, %639, %645 : vector<2x32xi1>, vector<2x32xf32>
    %c14_132 = arith.constant 14 : index
    %c0_133 = arith.constant 0 : index
    %647 = vector.load %arg13[%c14_132, %c0_133] : memref<16x64xf32, #tpu.memory_space<vmem>>, vector<2x32xf32>
    tpu.vector_store %arg13[%c14_132, %c0_133], %646 {strides = array<i32>} : memref<16x64xf32, #tpu.memory_space<vmem>>, vector<2x32xf32>,
    %cst_134 = arith.constant 0.000000e+00 : f32
    %648 = vector.shape_cast %576 : vector<2x1xi1> to vector<2x1xi1>
    %649 = vector.broadcast %648 : vector<2x1xi1> to vector<2x32xi1>
    %650 = vector.broadcast %cst_134 : f32 to vector<2x32xf32>
    %651 = arith.select %649, %642, %650 : vector<2x32xi1>, vector<2x32xf32>
    %c0_135 = arith.constant 0 : index
    %c32_136 = arith.constant 32 : index
    %652 = vector.load %arg13[%c0_135, %c32_136] : memref<16x64xf32, #tpu.memory_space<vmem>>, vector<2x32xf32>
    tpu.vector_store %arg13[%c0_135, %c32_136], %651 {strides = array<i32>} : memref<16x64xf32, #tpu.memory_space<vmem>>, vector<2x32xf32>,
    %c0_137 = arith.constant 0 : index
    %c0_138 = arith.constant 0 : index
    %653 = vector.load %arg13[%c0_137, %c0_138] : memref<16x64xf32, #tpu.memory_space<vmem>>, vector<16x64xf32>
    %c0_139 = arith.constant 0 : index
    %c0_140 = arith.constant 0 : index
    %654 = vector.load %arg8[%c0_139, %c0_140] : memref<64x32xf32, #tpu.memory_space<vmem>>, vector<64x32xf32>
    %cst_141 = arith.constant dense<0.000000e+00> : vector<16x32xf32>
    %655 = tpu.matmul %653, %654, %cst_141 {dimension_numbers = #tpu.dot_dimension_numbers<[1], [0], [0], [1], [0, 0, 1, 1], [], []>} : vector<16x64xf32>, vector<64x32xf32>, vector<16x32xf32> -> vector<16x32xf32>
    %c0_142 = arith.constant 0 : index
    %c0_143 = arith.constant 0 : index
    %656 = vector.load %arg9[%c0_142, %c0_143] : memref<1x32xf32, #tpu.memory_space<vmem>>, vector<1x32xf32>
    %657 = vector.broadcast %656 : vector<1x32xf32> to vector<16x32xf32>
    %658 = arith.addf %655, %657 : vector<16x32xf32>
    %cst_144 = arith.constant 0.000000e+00 : f32
    %659 = vector.broadcast %cst_144 : f32 to vector<16x32xf32>
    %660 = arith.maximumf %658, %659 : vector<16x32xf32>
    %c0_145 = arith.constant 0 : index
    %c0_146 = arith.constant 0 : index
    %661 = vector.load %arg10[%c0_145, %c0_146] : memref<32x1xf32, #tpu.memory_space<vmem>>, vector<32x1xf32>
    %cst_147 = arith.constant dense<0.000000e+00> : vector<16x1xf32>
    %662 = tpu.matmul %660, %661, %cst_147 {dimension_numbers = #tpu.dot_dimension_numbers<[1], [0], [0], [1], [0, 0, 1, 1], [], []>} : vector<16x32xf32>, vector<32x1xf32>, vector<16x1xf32> -> vector<16x1xf32>
    %c0_148 = arith.constant 0 : index
    %c0_149 = arith.constant 0 : index
    %663 = vector.load %arg11[%c0_148, %c0_149] : memref<1x1xf32, #tpu.memory_space<vmem>>, vector<1x1xf32>
    %664 = vector.broadcast %663 : vector<1x1xf32> to vector<16x1xf32>
    %665 = arith.addf %662, %664 : vector<16x1xf32>
    %666 = arith.negf %665 : vector<16x1xf32>
    %667 = math.exp %666 : vector<16x1xf32>
    %cst_150 = arith.constant 1.000000e+00 : f32
    %668 = vector.broadcast %cst_150 : f32 to vector<16x1xf32>
    %669 = arith.addf %668, %667 : vector<16x1xf32>
    %670 = arith.divf %668, %669 : vector<16x1xf32>
    %c0_151 = arith.constant 0 : index
    %c0_152 = arith.constant 0 : index
    %671 = vector.load %arg12[%c0_151, %c0_152] : memref<16x1xf32, #tpu.memory_space<vmem>>, vector<16x1xf32>
    tpu.vector_store %arg12[%c0_151, %c0_152], %670 {strides = array<i32>} : memref<16x1xf32, #tpu.memory_space<vmem>>, vector<16x1xf32>,
    return
  }
}

</mosaic_0001>

<bundles_post_ra>
// kernel: sub_model_forward.1
= control target key start
LH: loop header
LB: loop body
LE: loop exit
PB: predicated region body
PF: predicated region fallthrough
CT: control target
= control target key end

     0   :  { %v2943_v0 = vmov 0.0|0.0   ;;  %v2944_v4 = vmov 0.0   ;;  %vm2945_vm0 = vmmov 0   ;;  %vm62_vm1 = vcmask 130048   ;;  %s2946_s22 = smov 64   ;;  %s3637_s4 = inlined_call_operand.vmem [shape: f32[32,96], index: 4, kind: input, shape index: {}]   ;;  %s3638_s2 = inlined_call_operand.vmem [shape: f32[16,192], index: 2, kind: input, shape index: {}]   ;;  %s3639_s6 = inlined_call_operand.vmem [shape: f32[1,32], index: 6, kind: input, shape index: {}]   ;;  %s3640_s0 = inlined_call_operand.vmem [shape: f32[16,16], index: 0, kind: input, shape index: {}]   ;;  %s3641_s5 = inlined_call_operand.vmem [shape: f32[32,96], index: 5, kind: input, shape index: {}]   ;;  %s3642_s3 = inlined_call_operand.vmem [shape: f32[1,192], index: 3, kind: input, shape index: {}]   ;;  %s3643_s1 = inlined_call_operand.vmem [shape: f32[2,1], index: 1, kind: input, shape index: {}]   ;;  %s3644_s7 = inlined_call_operand.vmem [shape: f32[1,32], index: 7, kind: input, shape index: {}]   ;;  %s3645_s8 = inlined_call_operand.vmem [shape: f32[64,32], index: 8, kind: input, shape index: {}]   ;;  %s3646_s10 = inlined_call_operand.vmem [shape: f32[32,1], index: 10, kind: input, shape index: {}]   ;;  %s3647_s11 = inlined_call_operand.<no memory space> [shape: f32[1,1], index: 11, kind: input, shape index: {}]   ;;  %s3648_s9 = inlined_call_operand.vmem [shape: f32[1,32], index: 9, kind: input, shape index: {}]   ;;  %s3649_s12 = inlined_call_operand.vmem [shape: f32[16,1], index: 12, kind: output, shape index: {}]  }
   0x1   :  { %2678 = vmatprep.subr.bf16.mxu1 %v2943_v0  ;;  %v146_v1 = vld [vmem:[%s3637_s4] sm:$0xff]  ;;  %v147_v2 = vld [vmem:[%s3637_s4 + $0x8] sm:$0xff]  ;;  %133 = vmatprep.mubr.f32.mxu0 %v2944_v4  ;;  %v49_v6 = vld [vmem:[%s3638_s2 + $0x18] sm:$0xff]  ;;  %v52_v29 = vlaneseq  ;;  %v2947_v39 = vmov 0   ;;  %vm404_vm5 = vcmask 254976   ;;  %vm158_vm6 = vcmask 261120  }
   0x2   :  { %v47_v3 = vld [vmem:[%s3638_s2 + $0x8] sm:$0xff]  ;;  %v3026_v5 = vpack.c.bf16 %v147_v2, %v146_v1  ;;  %v46_v7 = vld [vmem:[%s3638_s2] sm:$0xff]  ;;  %v48_v8 = vld [vmem:[%s3638_s2 + $0x10] sm:$0xff]  ;;  %2476 = vmatprep.mubr.msk.f32.mxu1 %vm2945_vm0, %v2944_v4  ;;  %2805 = vset.pattern.permute.xlu1 %v2947_v39 }
   0x3   :  { %v2674_v9 = vpack.c.bf16 %v49_v6, %v47_v3  ;;  %v2676_v10 = vpack.c.bf16 %v48_v8, %v46_v7  ;;  %v148_v11 = vld [vmem:[%s3637_s4 + $0x10] sm:$0xff]  ;;  %v149_v12 = vld [vmem:[%s3637_s4 + $0x18] sm:$0xff]  ;;  %v2325_v14 = vld [vmem:[%s3639_s6] ss:$0 sm:$0xff]  ;;  %v3107_v30 = vshrl.u32 %v52_v29, 7  ;;  %2806 = vset.pattern.permute.xlu0 %v2947_v39 }
   0x4   :  { %2680 = vmatpush3.bf16.msra.mxu1 %v3026_v5  ;;  %v3046_v13 = vpack.c.bf16 %v149_v12, %v148_v11  ;;  %v44_v15 = vld [vmem:[%s3640_s0] sm:$0xff]  ;;  %244 = vrot.lane.b32.xlu0 %v2325_v14, %s2946_s22  ;;  %v45_v16 = vld [vmem:[%s3640_s0 + $0x8] sm:$0xff]  ;;  %v152_v19 = vld [vmem:[%s3641_s5 + $0x10] sm:$0xff] }
   0x5   :  { %2675 = vmatprep.subr.bf16.mxu0 %v2674_v9  ;;  %2681 = vmatprep.subr.bf16.mxu1 %v2943_v0  ;;  %v150_v17 = vld [vmem:[%s3641_s5] sm:$0xff]  ;;  %v151_v18 = vld [vmem:[%s3641_s5 + $0x8] sm:$0xff]  ;;  %v153_v21 = vld [vmem:[%s3641_s5 + $0x18] sm:$0xff]  ;;  %v54_v31 = vsub.s32 0, %v3107_v30 }
   0x6   :  { %2677 = vmatpush1.bf16.msra.mxu0 %v2676_v10  ;;  %v3081_v20 = vpack.c.bf16 %v151_v18, %v150_v17  ;;  %v3089_v22 = vpack.c.bf16 %v153_v21, %v152_v19  ;;  %v3113_v32 = vld [vmem:[%s3642_s3] sm:$0x3] }
   0x7   :  { %2684 = vmatprep.subr.bf16.mxu0 %v2943_v0  ;;  %v55_v33 = vrot.slane %v3113_v32, %v54_v31  ;;  %v3124_v40 = vld [vmem:[%s3643_s1] sm:$0x3]  ;;  %s2948_s1 = smov 96  }
   0x8   :  { %2683 = vmatpush3.bf16.msra.mxu1 %v3046_v13  ;;  %vm156_vm2 = vcmp.gt.f32.partialorder %v3124_v40, 0.0  ;;  %v2328_v49 = vld [vmem:[%s3644_s7] ss:$0 sm:$0xff]  ;;  %s2949_s7 = smov 32   ;;  %vm157_vm4 = vcmp.gt.f32.partialorder %v3124_v40, 7.0  ;;  %vm412_vm8 = vcmp.gt.f32.partialorder %v3124_v40, 1.0 }
   0x9   :  { %2322 = vmatmul.mubr.msk.f32.vlgmr.msra.gmra.mrb[0].mxu0 %vm62_vm1, %v44_v15  ;;  %2690 = vmatprep.subr.bf16.mxu1 %v2943_v0  ;;  %v385_v45 = vsel %vm156_vm2, 1, %v2947_v39  ;;  %v391_v9 = vsel %vm157_vm4, 1, %v2947_v39  ;;  %v58_v15 = vsub.s32 1, %v3107_v30  ;;  %vm413_vm9 = vcmp.gt.f32.partialorder %v3124_v40, 6.0 }
   0xa   :  { %139 = vmatprep.mubr.f32.mxu0 %v2944_v4  ;;  %2686 = vmatpush3.bf16.msra.mxu0 %v3081_v20  ;;  %vm661_vm12 = vcmp.gt.f32.partialorder %v3124_v40, 2.0  ;;  %vm662_vm13 = vcmp.gt.f32.partialorder %v3124_v40, 5.0  ;;  %vm915_vm2 = vcmp.gt.f32.partialorder %v3124_v40, 4.0 }
   0xb   :  { %2477 = vmatmul.mubr.f32.vlgmr.msra.gmra.mrb[0].mxu1 %v2944_v4  ;;  %2687 = vmatprep.subr.bf16.mxu0 %v2943_v0 }
   0xc   :  { %2692 = vmatpush3.bf16.msra.mxu1 %v3026_v5  ;;  %2498 = vmatprep.mubr.msk.f32.mxu1 %vm2945_vm0, %v2944_v4 }
   0xd   :  { %2693 = vmatprep.subr.bf16.mxu1 %v2943_v0  ;;  %2323 = vmatmul.mubr.msk.f32.gmra.mrb[2].mxu0 %vm62_vm1, %v45_v16  ;;  %v3169_v16 = vrot.slane %v3113_v32, %v58_v15  ;;  %vm914_vm1 = vcmp.gt.f32.partialorder %v3124_v40, 3.0 }
   0xe   :  { %2487 = vmatprep.mubr.msk.f32.mxu0 %vm2945_vm0, %v2944_v4  ;;  %2689 = vmatpush3.bf16.msra.mxu0 %v3089_v22 }
   0xf   :  { %2696 = vmatprep.subr.bf16.mxu0 %v2943_v0 }
  0x10   :  { %2695 = vmatpush3.bf16.msra.mxu1 %v3046_v13 }
  0x11   :  { %2702 = vmatprep.subr.bf16.mxu1 %v2943_v0  ;;  %2488 = vmatmul.mubr.f32.vlgmr.msra.gmra.mrb[4].mxu0 %v2944_v4 }
  0x12   :  { %2698 = vmatpush3.bf16.msra.mxu0 %v3081_v20  ;;  %2509 = vmatprep.mubr.msk.f32.mxu0 %vm2945_vm0, %v2944_v4 }
  0x13   :  { %2699 = vmatprep.subr.bf16.mxu0 %v2943_v0 }
  0x16   :  { %2701 = vmatpush3.bf16.msra.mxu0 %v3089_v22 }
  0x17   :  { %2708 = vmatprep.subr.bf16.mxu0 %v2943_v0 }
  0x76   :  { %v3101_v24 = vpop.permute.xlu0 %244 }
  0xdc   :  { %v135_v23 = vpop.f32.mrb[0].mxu0 }
  0xdd   :  { %v3103_v25 = vpop.f32.mrb[1].mxu0  ;;  %v3116_v34 = vadd.f32 %v135_v23, %v55_v33 }
  0xde   :  { %v228_v26 = vpop.f32.mrb[0].mxu1 }
  0xdf   :  { %v247_v27 = vadd.f32 %v3101_v24, %v228_v26  ;;  %v2478_v28 = vpop.f32.mrb[1].mxu1  ;;  %v232_v35 = vadd.f32 %v228_v26, %v3116_v34 }
  0xe0   :  { %v141_v44 = vpop.f32.mrb[2].mxu0 }
  0xe1   :  { %249 = vrot.lane.b32.xlu0 %v247_v27, %s2946_s22  ;;  %v2324_v36 = vmul.f32 -1.442695, %v232_v35  ;;  %v143_v46 = vpop.f32.mrb[3].mxu0  ;;  %v3149_v1 = vadd.f32 %v141_v44, %v55_v33 }
  0xe2   :  { %v3172_v17 = vadd.f32 %v143_v46, %v3169_v16 }
  0xe3   :  { %2807 = vpow2.f32 %v2324_v36 }
  0xe4   :  { %v333_v47 = vpop.f32.mrb[4].mxu0 }
  0xe5   :  { %v2489_v48 = vpop.f32.mrb[5].mxu0  ;;  %v338_v50 = vrot.slane %v333_v47, 2 }
  0xed   :  { %v2808_v37 = vpop.eup %2807 }
  0xee   :  { %v236_v38 = vadd.f32 1.0, %v2808_v37 }
  0xf0   :  { %2809 = vrcp.f32 %v236_v38 }
  0xfa   :  { %v2810_v41 = vpop.eup %2809 }
  0xfb   :  { %v259_v55 = vsub.f32 1.0, %v2810_v41  ;;  %v265_v58 = vmul.f32 0.0, %v2810_v41 }
 0x153   :  { %v250_v42 = vpop.permute.xlu0 %249 }
 0x154   :  { %v252_v43 = vmul.f32 %v2810_v41, %v250_v42 }
 0x156   :  { %254 = vrot.lane.b32.xlu1 %v252_v43, %s2946_s22 }
 0x15a   :  { %387 = vperm.xlu1 %2805, %v385_v45  }
 0x15e   :  { %361 = vrot.lane.b32.xlu1 %v2328_v49, %s2946_s22 }
 0x162   :  { %339 = vrot.lane.b32.xlu1 %v338_v50, %s2948_s1 }
 0x1c8   :  { %v255_v51 = vpop.permute.xlu1 %254 }
 0x1c9   :  { %v257_v52 = vadd.f32 %v255_v51, %v3116_v34 }
 0x1cb   :  { %2811 = vtanh.f32 %v257_v52 }
 0x1d5   :  { %v2812_v53 = vpop.eup %2811 }
 0x1d6   :  { %261 = vrot.lane.b32.xlu0 %v2812_v53, %s2948_s1 }
 0x1d9   :  { %v3136_v54 = vpop.permute.xlu1 %387 }
 0x1da   :  { %vm389_vm3 = vcmp.eq.s32.totalorder %v3136_v54, 1 }
 0x1dd   :  { %v3138_v56 = vpop.permute.xlu1 %361 }
 0x1de   :  { %v364_v60 = vadd.f32 %v3138_v56, %v333_v47 }
 0x1e0   :  { %v366_v63 = vrot.slane %v364_v60, 2 }
 0x1e1   :  { %v340_v2 = vpop.permute.xlu1 %339 }
 0x1e2   :  { %v342_v3 = vadd.f32 %v340_v2, %v3149_v1  ;;  %v349_v23 = vadd.f32 %v340_v2, %v3172_v17 }
 0x1e4   :  { %v2326_v6 = vmul.f32 -1.442695, %v342_v3  ;;  %v2327_v29 = vmul.f32 -1.442695, %v349_v23 }
 0x1e6   :  { %2813 = vpow2.f32 %v2326_v6 }
 0x1f0   :  { %v2814_v7 = vpop.eup %2813 }
 0x1f1   :  { %v346_v8 = vadd.f32 1.0, %v2814_v7 }
 0x1f3   :  { %2815 = vrcp.f32 %v346_v8 }
 0x1fd   :  { %v2816_v11 = vpop.eup %2815 }
 0x248   :  { %v262_v57 = vpop.permute.xlu0 %261 }
 0x249   :  { %v264_v59 = vmul.f32 %v262_v57, %v259_v55 }
 0x24b   :  { %v266_v61 = vadd.f32 %v265_v58, %v264_v59  ;;  %v633_v58 = vsel %vm412_vm8, 1, %v2947_v39 }
 0x24d   :  { %v3144_v62 = vsel %vm389_vm3, %v266_v61, 0.0 }
 0x24e   :  { %401 = vrot.lane.b32.xlu0 %v3144_v62, %s2948_s1  ;;  %v515_v3 = vrot.slane %v3144_v62, 6 }
 0x252   :  { %367 = vrot.lane.b32.xlu0 %v366_v63, %s2949_s7 }
 0x256   :  { %393 = vperm.xlu0 %2806, %v391_v9  }
 0x2c0   :  { %v3154_v10 = vpop.permute.xlu0 %401 }
 0x2c1   :  { %405 = vst.msk [vmem:[#allocation2] sm:$0x3] %vm404_vm5, %v3154_v10  ;;  %2499 = vmatmul.mubr.msk.f32.vlgmr.msra.gmra.mrb[2].mxu1 %vm158_vm6, %v3154_v10 }
 0x2c2   :  { %2704 = vmatpush3.bf16.msra.mxu1 %v3026_v5  ;;  %2520 = vmatprep.mubr.msk.f32.mxu1 %vm2945_vm0, %v2944_v4 }
 0x2c3   :  { %2705 = vmatprep.subr.bf16.mxu1 %v2943_v0 }
 0x2c4   :  { %v368_v12 = vpop.permute.xlu0 %367 }
 0x2c5   :  { %v370_v14 = vmul.f32 %v2816_v11, %v368_v12 }
 0x2c6   :  { %2707 = vmatpush3.bf16.msra.mxu1 %v3046_v13 }
 0x2c7   :  { %372 = vrot.lane.b32.xlu1 %v370_v14, %s2946_s22  ;;  %2714 = vmatprep.subr.bf16.mxu1 %v2943_v0  ;;  %v644_v14 = vsel %vm413_vm9, 1, %v2947_v39 }
 0x2d5   :  { %v3179_v41 = vpop.permute.xlu0 %393 }
 0x2d6   :  { %vm395_vm7 = vcmp.eq.s32.totalorder %v3179_v41, 1  ;;  %v2214_v41 = vld [vmem:[%s3646_s10 + $0x18] sm:$0xff] }
 0x339   :  { %v373_v18 = vpop.permute.xlu1 %372 }
 0x33a   :  { %v375_v19 = vadd.f32 %v373_v18, %v3172_v17 }
 0x33c   :  { %2817 = vtanh.f32 %v375_v19 }
 0x33d   :  { %2819 = vpow2.f32 %v2327_v29 }
 0x346   :  { %v2818_v21 = vpop.eup %2817 }
 0x347   :  { %379 = vrot.lane.b32.xlu1 %v2818_v21, %s2948_s1  ;;  %v2820_v31 = vpop.eup %2819 }
 0x348   :  { %v353_v32 = vadd.f32 1.0, %v2820_v31 }
 0x34a   :  { %2821 = vrcp.f32 %v353_v32 }
 0x354   :  { %v2822_v33 = vpop.eup %2821 }
 0x355   :  { %v377_v35 = vsub.f32 1.0, %v2822_v33  ;;  %v383_v37 = vmul.f32 0.0, %v2822_v33 }
 0x394   :  { %v482_v26 = vpop.f32.mrb[2].mxu1 }
 0x395   :  { %v496_v27 = vadd.f32 %v482_v26, %v3101_v24  ;;  %v2500_v28 = vpop.f32.mrb[3].mxu1  ;;  %v487_v45 = vrot.slane %v482_v26, 6 }
 0x397   :  { %v498_v30 = vrot.slane %v496_v27, 6  ;;  %v489_v46 = vadd.f32 %v487_v45, %v3116_v34 }
 0x399   :  { %499 = vrot.lane.b32.xlu1 %v498_v30, %s2946_s22  ;;  %v2330_v47 = vmul.f32 -1.442695, %v489_v46 }
 0x39b   :  { %2823 = vpow2.f32 %v2330_v47 }
 0x3a5   :  { %v2824_v48 = vpop.eup %2823 }
 0x3a6   :  { %v493_v49 = vadd.f32 1.0, %v2824_v48 }
 0x3a8   :  { %2825 = vrcp.f32 %v493_v49 }
 0x3b2   :  { %v2826_v50 = vpop.eup %2825 }
 0x3b3   :  { %v509_v6 = vsub.f32 1.0, %v2826_v50  ;;  %v517_v8 = vmul.f32 %v2826_v50, %v515_v3 }
 0x3b9   :  { %v380_v36 = vpop.permute.xlu1 %379 }
 0x3ba   :  { %v382_v38 = vmul.f32 %v380_v36, %v377_v35 }
 0x3bc   :  { %v384_v42 = vadd.f32 %v383_v37, %v382_v38 }
 0x3be   :  { %v397_v43 = vrot.slane %v384_v42, 6 }
 0x3c0   :  { %v3184_v44 = vsel %vm395_vm7, %v397_v43, 0.0 }
 0x3c1   :  { %2510 = vmatmul.mubr.msk.f32.vlgmr.msra.gmra.mrb[6].mxu0 %vm158_vm6, %v3184_v44  ;;  %v629_v43 = vrot.slane %v3184_v44, 4 }
 0x3c2   :  { %2710 = vmatpush3.bf16.msra.mxu0 %v3081_v20  ;;  %2531 = vmatprep.mubr.msk.f32.mxu0 %vm2945_vm0, %v2944_v4 }
 0x3c3   :  { %2711 = vmatprep.subr.bf16.mxu0 %v2943_v0 }
 0x3c6   :  { %2713 = vmatpush3.bf16.msra.mxu0 %v3089_v22 }
 0x3c7   :  { %2720 = vmatprep.subr.bf16.mxu0 %v2943_v0 }
 0x40b   :  { %v500_v51 = vpop.permute.xlu1 %499 }
 0x40c   :  { %v502_v52 = vmul.f32 %v2826_v50, %v500_v51 }
 0x40e   :  { %504 = vrot.lane.b32.xlu0 %v502_v52, %s2946_s22 }
 0x480   :  { %v505_v53 = vpop.permute.xlu0 %504 }
 0x481   :  { %v507_v55 = vadd.f32 %v505_v53, %v3116_v34 }
 0x483   :  { %2827 = vtanh.f32 %v507_v55 }
 0x48d   :  { %v2828_v57 = vpop.eup %2827 }
 0x48e   :  { %511 = vrot.lane.b32.xlu1 %v2828_v57, %s2948_s1 }
 0x492   :  { %635 = vperm.xlu1 %2805, %v633_v58  }
 0x494   :  { %v587_v59 = vpop.f32.mrb[6].mxu0 }
 0x495   :  { %v592_v60 = vrot.slane %v587_v59, 4  ;;  %v610_v61 = vadd.f32 %v587_v59, %v3138_v56  ;;  %v2511_v63 = vpop.f32.mrb[7].mxu0 }
 0x497   :  { %593 = vrot.lane.b32.xlu0 %v592_v60, %s2948_s1  ;;  %v612_v2 = vrot.slane %v610_v61, 4 }
 0x49b   :  { %613 = vrot.lane.b32.xlu0 %v612_v2, %s2949_s7 }
 0x500   :  { %v512_v7 = vpop.permute.xlu1 %511 }
 0x501   :  { %v514_v9 = vmul.f32 %v512_v7, %v509_v6 }
 0x503   :  { %v518_v11 = vadd.f32 %v517_v8, %v514_v9 }
 0x505   :  { %v639_v12 = vrot.slane %v518_v11, 2 }
 0x507   :  { %640 = vrot.lane.b32.xlu1 %v639_v12, %s2948_s1 }
 0x509   :  { %v594_v15 = vpop.permute.xlu0 %593 }
 0x50a   :  { %v596_v18 = vadd.f32 %v594_v15, %v3149_v1  ;;  %v603_v35 = vadd.f32 %v594_v15, %v3172_v17 }
 0x50b   :  { %646 = vperm.xlu1 %2805, %v644_v14  }
 0x50c   :  { %v2332_v19 = vmul.f32 -1.442695, %v596_v18  ;;  %v2333_v36 = vmul.f32 -1.442695, %v603_v35 }
 0x50d   :  { %v614_v26 = vpop.permute.xlu0 %613 }
 0x50e   :  { %2829 = vpow2.f32 %v2332_v19 }
 0x511   :  { %v3209_v28 = vpop.permute.xlu1 %635 }
 0x512   :  { %vm637_vm10 = vcmp.eq.s32.totalorder %v3209_v28, 1 }
 0x518   :  { %v2830_v21 = vpop.eup %2829 }
 0x519   :  { %v600_v62 = vadd.f32 1.0, %v2830_v21 }
 0x51b   :  { %2831 = vrcp.f32 %v600_v62  ;;  %v886_v62 = vsel %vm661_vm12, 1, %v2947_v39 }
 0x525   :  { %v2832_v23 = vpop.eup %2831 }
 0x526   :  { %v616_v27 = vmul.f32 %v2832_v23, %v614_v26 }
 0x528   :  { %618 = vrot.lane.b32.xlu0 %v616_v27, %s2946_s22 }
 0x579   :  { %v641_v29 = vpop.permute.xlu1 %640 }
 0x57a   :  { %v3215_v30 = vsel %vm637_vm10, %v641_v29, %v3154_v10  ;;  %v653_v31 = vsel %vm637_vm10, %v641_v29, 0.0 }
 0x57b   :  { %654 = vst.msk [vmem:[#allocation2 + $0x2] sm:$0x3] %vm404_vm5, %v653_v31  ;;  %2521 = vmatmul.mubr.msk.f32.vlgmr.msra.gmra.mrb[4].mxu1 %vm158_vm6, %v3215_v30  ;;  %v765_v8 = vrot.slane %v3215_v30, 4 }
 0x57c   :  { %2716 = vmatpush3.bf16.msra.mxu1 %v3026_v5  ;;  %2542 = vmatprep.mubr.msk.f32.mxu1 %vm2945_vm0, %v2944_v4 }
 0x57d   :  { %2717 = vmatprep.subr.bf16.mxu1 %v2943_v0 }
 0x580   :  { %2719 = vmatpush3.bf16.msra.mxu1 %v3046_v13 }
 0x581   :  { %2726 = vmatprep.subr.bf16.mxu1 %v2943_v0 }
 0x58a   :  { %v3232_v49 = vpop.permute.xlu1 %646 }
 0x58b   :  { %vm648_vm11 = vcmp.eq.s32.totalorder %v3232_v49, 1 }
 0x59a   :  { %v619_v10 = vpop.permute.xlu0 %618 }
 0x59b   :  { %v621_v32 = vadd.f32 %v619_v10, %v3172_v17 }
 0x59d   :  { %2833 = vtanh.f32 %v621_v32 }
 0x59e   :  { %2835 = vpow2.f32 %v2333_v36 }
 0x5a7   :  { %v2834_v33 = vpop.eup %2833 }
 0x5a8   :  { %625 = vrot.lane.b32.xlu0 %v2834_v33, %s2948_s1  ;;  %v2836_v37 = vpop.eup %2835 }
 0x5a9   :  { %v607_v38 = vadd.f32 1.0, %v2836_v37  ;;  %v897_v37 = vsel %vm662_vm13, 1, %v2947_v39 }
 0x5ab   :  { %2837 = vrcp.f32 %v607_v38 }
 0x5b5   :  { %v2838_v42 = vpop.eup %2837 }
 0x5b6   :  { %v623_v45 = vsub.f32 1.0, %v2838_v42  ;;  %v631_v47 = vmul.f32 %v2838_v42, %v629_v43 }
 0x61a   :  { %v626_v46 = vpop.permute.xlu0 %625 }
 0x61b   :  { %v628_v48 = vmul.f32 %v626_v46, %v623_v45 }
 0x61d   :  { %v3234_v50 = vadd.f32 %v631_v47, %v628_v48 }
 0x61f   :  { %v650_v51 = vrot.slane %v3234_v50, 4 }
 0x621   :  { %v3243_v52 = vsel %vm648_vm11, %v650_v51, %v3184_v44 }
 0x622   :  { %2532 = vmatmul.mubr.msk.f32.vlgmr.msra.gmra.mrb[8].mxu0 %vm158_vm6, %v3243_v52 }
 0x623   :  { %2722 = vmatpush3.bf16.msra.mxu0 %v3081_v20  ;;  %2553 = vmatprep.mubr.msk.f32.mxu0 %vm2945_vm0, %v2944_v4 }
 0x624   :  { %2723 = vmatprep.subr.bf16.mxu0 %v2943_v0 }
 0x627   :  { %2725 = vmatpush3.bf16.msra.mxu0 %v3089_v22 }
 0x628   :  { %2732 = vmatprep.subr.bf16.mxu0 %v2943_v0 }
 0x64e   :  { %v732_v53 = vpop.f32.mrb[4].mxu1 }
 0x64f   :  { %v746_v55 = vadd.f32 %v732_v53, %v3101_v24  ;;  %v2522_v57 = vpop.f32.mrb[5].mxu1  ;;  %v737_v59 = vrot.slane %v732_v53, 4 }
 0x651   :  { %v748_v58 = vrot.slane %v746_v55, 4  ;;  %v739_v60 = vadd.f32 %v737_v59, %v3116_v34 }
 0x653   :  { %749 = vrot.lane.b32.xlu1 %v748_v58, %s2946_s22  ;;  %v2335_v61 = vmul.f32 -1.442695, %v739_v60 }
 0x655   :  { %2839 = vpow2.f32 %v2335_v61 }
 0x65f   :  { %v2840_v63 = vpop.eup %2839 }
 0x660   :  { %v743_v2 = vadd.f32 1.0, %v2840_v63 }
 0x662   :  { %2841 = vrcp.f32 %v743_v2 }
 0x66c   :  { %v2842_v3 = vpop.eup %2841 }
 0x66d   :  { %v759_v26 = vsub.f32 1.0, %v2842_v3 }
 0x6c5   :  { %v750_v6 = vpop.permute.xlu1 %749 }
 0x6c6   :  { %v752_v7 = vmul.f32 %v2842_v3, %v750_v6  ;;  %v882_v6 = vrot.slane %v3243_v52, 6 }
 0x6c8   :  { %754 = vrot.lane.b32.xlu0 %v752_v7, %s2946_s22 }
 0x6cc   :  { %766 = vrot.lane.b32.xlu0 %v765_v8, %s2949_s7 }
 0x6f5   :  { %v840_v9 = vpop.f32.mrb[8].mxu0 }
 0x6f6   :  { %v863_v11 = vadd.f32 %v840_v9, %v3138_v56  ;;  %v2533_v12 = vpop.f32.mrb[9].mxu0  ;;  %v845_v21 = vrot.slane %v840_v9, 6 }
 0x6f8   :  { %v865_v14 = vrot.slane %v863_v11, 6 }
 0x6fa   :  { %866 = vrot.lane.b32.xlu0 %v865_v14, %s2949_s7 }
 0x73a   :  { %v755_v15 = vpop.permute.xlu0 %754 }
 0x73b   :  { %v757_v18 = vadd.f32 %v755_v15, %v3116_v34 }
 0x73d   :  { %2843 = vtanh.f32 %v757_v18 }
 0x73e   :  { %v767_v23 = vpop.permute.xlu0 %766 }
 0x73f   :  { %v769_v29 = vmul.f32 %v2842_v3, %v767_v23 }
 0x747   :  { %v2844_v19 = vpop.eup %2843 }
 0x748   :  { %761 = vrot.lane.b32.xlu1 %v2844_v19, %s2948_s1 }
 0x74c   :  { %846 = vrot.lane.b32.xlu1 %v845_v21, %s2948_s1 }
 0x750   :  { %888 = vperm.xlu1 %2805, %v886_v62  }
 0x76c   :  { %v867_v45 = vpop.permute.xlu0 %866 }
 0x7ba   :  { %v762_v27 = vpop.permute.xlu1 %761 }
 0x7bb   :  { %v764_v31 = vmul.f32 %v762_v27, %v759_v26 }
 0x7bd   :  { %v770_v10 = vadd.f32 %v769_v29, %v764_v31 }
 0x7be   :  { %v847_v32 = vpop.permute.xlu1 %846 }
 0x7bf   :  { %v892_v33 = vrot.slane %v770_v10, 4  ;;  %v849_v35 = vadd.f32 %v847_v32, %v3149_v1  ;;  %v856_v59 = vadd.f32 %v847_v32, %v3172_v17 }
 0x7c1   :  { %v2337_v36 = vmul.f32 -1.442695, %v849_v35  ;;  %893 = vrot.lane.b32.xlu0 %v892_v33, %s2948_s1  ;;  %v2338_v60 = vmul.f32 -1.442695, %v856_v59 }
 0x7c3   :  { %2845 = vpow2.f32 %v2337_v36 }
 0x7c5   :  { %899 = vperm.xlu0 %2806, %v897_v37  }
 0x7cd   :  { %v2846_v38 = vpop.eup %2845 }
 0x7ce   :  { %v853_v42 = vadd.f32 1.0, %v2846_v38 }
 0x7cf   :  { %v3271_v47 = vpop.permute.xlu1 %888 }
 0x7d0   :  { %2847 = vrcp.f32 %v853_v42  ;;  %vm890_vm14 = vcmp.eq.s32.totalorder %v3271_v47, 1 }
 0x7da   :  { %v2848_v43 = vpop.eup %2847 }
 0x7db   :  { %v869_v46 = vmul.f32 %v2848_v43, %v867_v45  ;;  %v1135_v45 = vsel %vm914_vm1, 1, %v2947_v39 }
 0x7dd   :  { %871 = vrot.lane.b32.xlu1 %v869_v46, %s2946_s22 }
 0x833   :  { %v894_v48 = vpop.permute.xlu0 %893 }
 0x834   :  { %v3277_v53 = vsel %vm890_vm14, %v894_v48, %v3215_v30  ;;  %v906_v55 = vsel %vm890_vm14, %v894_v48, 0.0 }
 0x835   :  { %907 = vst.msk [vmem:[#allocation2 + $0x4] sm:$0x3] %vm404_vm5, %v906_v55  ;;  %2543 = vmatmul.mubr.msk.f32.vlgmr.msra.gmra.mrb[6].mxu1 %vm158_vm6, %v3277_v53  ;;  %v1018_v37 = vrot.slane %v3277_v53, 2 }
 0x836   :  { %2728 = vmatpush3.bf16.msra.mxu1 %v3026_v5  ;;  %2564 = vmatprep.mubr.msk.f32.mxu1 %vm2945_vm0, %v2944_v4 }
 0x837   :  { %2729 = vmatprep.subr.bf16.mxu1 %v2943_v0 }
 0x83a   :  { %2731 = vmatpush3.bf16.msra.mxu1 %v3046_v13 }
 0x83b   :  { %2738 = vmatprep.subr.bf16.mxu1 %v2943_v0 }
 0x844   :  { %v3294_v11 = vpop.permute.xlu0 %899 }
 0x845   :  { %vm901_vm15 = vcmp.eq.s32.totalorder %v3294_v11, 1 }
 0x84f   :  { %v872_v30 = vpop.permute.xlu1 %871 }
 0x850   :  { %v874_v57 = vadd.f32 %v872_v30, %v3172_v17 }
 0x852   :  { %2849 = vtanh.f32 %v874_v57 }
 0x853   :  { %2851 = vpow2.f32 %v2338_v60 }
 0x85c   :  { %v2850_v58 = vpop.eup %2849 }
 0x85d   :  { %878 = vrot.lane.b32.xlu1 %v2850_v58, %s2948_s1  ;;  %v2852_v61 = vpop.eup %2851 }
 0x85e   :  { %v860_v63 = vadd.f32 1.0, %v2852_v61  ;;  %v1146_v61 = vsel %vm915_vm2, 1, %v2947_v39 }
 0x860   :  { %2853 = vrcp.f32 %v860_v63 }
 0x86a   :  { %v2854_v2 = vpop.eup %2853 }
 0x86b   :  { %v876_v3 = vsub.f32 1.0, %v2854_v2  ;;  %v884_v8 = vmul.f32 %v2854_v2, %v882_v6 }
 0x8cf   :  { %v879_v7 = vpop.permute.xlu1 %878 }
 0x8d0   :  { %v881_v9 = vmul.f32 %v879_v7, %v876_v3 }
 0x8d2   :  { %v3296_v12 = vadd.f32 %v884_v8, %v881_v9 }
 0x8d4   :  { %v903_v14 = vrot.slane %v3296_v12, 2 }
 0x8d6   :  { %v3305_v15 = vsel %vm901_vm15, %v903_v14, %v3243_v52 }
 0x8d7   :  { %2554 = vmatmul.mubr.msk.f32.vlgmr.msra.gmra.mrb[10].mxu0 %vm158_vm6, %v3305_v15 }
 0x8d8   :  { %2734 = vmatpush3.bf16.msra.mxu0 %v3081_v20  ;;  %2575 = vmatprep.mubr.msk.f32.mxu0 %vm2945_vm0, %v2944_v4 }
 0x8d9   :  { %2735 = vmatprep.subr.bf16.mxu0 %v2943_v0 }
 0x8dc   :  { %2737 = vmatpush3.bf16.msra.mxu0 %v3089_v22 }
 0x8dd   :  { %2744 = vmatprep.subr.bf16.mxu0 %v2943_v0 }
 0x908   :  { %v985_v18 = vpop.f32.mrb[6].mxu1 }
 0x909   :  { %v999_v19 = vadd.f32 %v985_v18, %v3101_v24  ;;  %v2544_v21 = vpop.f32.mrb[7].mxu1  ;;  %v990_v62 = vrot.slane %v985_v18, 2 }
 0x90b   :  { %v1001_v52 = vrot.slane %v999_v19, 2  ;;  %v992_v23 = vadd.f32 %v990_v62, %v3116_v34 }
 0x90d   :  { %1002 = vrot.lane.b32.xlu0 %v1001_v52, %s2946_s22  ;;  %v2340_v26 = vmul.f32 -1.442695, %v992_v23 }
 0x90f   :  { %2855 = vpow2.f32 %v2340_v26 }
 0x919   :  { %v2856_v27 = vpop.eup %2855 }
 0x91a   :  { %v996_v29 = vadd.f32 1.0, %v2856_v27 }
 0x91c   :  { %2857 = vrcp.f32 %v996_v29 }
 0x926   :  { %v2858_v31 = vpop.eup %2857 }
 0x927   :  { %v1012_v2 = vsub.f32 1.0, %v2858_v31 }
 0x97f   :  { %v1003_v10 = vpop.permute.xlu0 %1002 }
 0x980   :  { %v1005_v32 = vmul.f32 %v2858_v31, %v1003_v10 }
 0x982   :  { %1007 = vrot.lane.b32.xlu1 %v1005_v32, %s2946_s22 }
 0x9aa   :  { %v1093_v33 = vpop.f32.mrb[10].mxu0 }
 0x9ab   :  { %v1115_v35 = vadd.f32 %v1093_v33, %v3138_v56  ;;  %1098 = vrot.lane.b32.xlu0 %v1093_v33, %s2948_s1  ;;  %v2555_v36 = vpop.f32.mrb[11].mxu0 }
 0x9ad   :  { %1117 = vrot.lane.b32.xlu1 %v1115_v35, %s2949_s7 }
 0x9b1   :  { %1019 = vrot.lane.b32.xlu1 %v1018_v37, %s2949_s7 }
 0x9f4   :  { %v1008_v38 = vpop.permute.xlu1 %1007 }
 0x9f5   :  { %v1010_v42 = vadd.f32 %v1008_v38, %v3116_v34 }
 0x9f7   :  { %2859 = vtanh.f32 %v1010_v42 }
 0xa01   :  { %v2860_v43 = vpop.eup %2859 }
 0xa02   :  { %1014 = vrot.lane.b32.xlu0 %v2860_v43, %s2948_s1 }
 0xa06   :  { %1137 = vperm.xlu0 %2806, %v1135_v45  }
 0xa1d   :  { %v1099_v46 = vpop.permute.xlu0 %1098 }
 0xa1e   :  { %v1101_v48 = vadd.f32 %v1099_v46, %v3149_v1 }
 0xa1f   :  { %v1118_v59 = vpop.permute.xlu1 %1117 }
 0xa20   :  { %v2342_v55 = vmul.f32 -1.442695, %v1101_v48 }
 0xa22   :  { %2861 = vpow2.f32 %v2342_v55 }
 0xa23   :  { %v1020_v63 = vpop.permute.xlu1 %1019 }
 0xa24   :  { %v1022_v6 = vmul.f32 %v2858_v31, %v1020_v63 }
 0xa2c   :  { %v2862_v30 = vpop.eup %2861 }
 0xa2d   :  { %v1105_v57 = vadd.f32 1.0, %v2862_v30 }
 0xa2f   :  { %2863 = vrcp.f32 %v1105_v57 }
 0xa39   :  { %v2864_v58 = vpop.eup %2863 }
 0xa3a   :  { %v1120_v60 = vmul.f32 %v2864_v58, %v1118_v59 }
 0xa3c   :  { %1122 = vrot.lane.b32.xlu1 %v1120_v60, %s2946_s22 }
 0xa40   :  { %1148 = vperm.xlu1 %2805, %v1146_v61  }
 0xa74   :  { %v1015_v3 = vpop.permute.xlu0 %1014 }
 0xa75   :  { %v1017_v7 = vmul.f32 %v1015_v3, %v1012_v2 }
 0xa77   :  { %v1023_v8 = vadd.f32 %v1022_v6, %v1017_v7 }
 0xa79   :  { %v1141_v9 = vrot.slane %v1023_v8, 6 }
 0xa7b   :  { %1142 = vrot.lane.b32.xlu0 %v1141_v9, %s2948_s1 }
 0xa85   :  { %v3335_v40 = vpop.permute.xlu0 %1137 }
 0xa86   :  { %vm1139_vm4 = vcmp.eq.s32.totalorder %v3335_v40, 1 }
 0xaae   :  { %v1123_v18 = vpop.permute.xlu1 %1122 }
 0xaaf   :  { %v1125_v19 = vadd.f32 %v1123_v18, %v3172_v17 }
 0xab1   :  { %2865 = vtanh.f32 %v1125_v19 }
 0xabb   :  { %v2866_v21 = vpop.eup %2865 }
 0xabc   :  { %1129 = vrot.lane.b32.xlu0 %v2866_v21, %s2948_s1 }
 0xabf   :  { %v3352_v32 = vpop.permute.xlu1 %1148 }
 0xac0   :  { %vm1150_vm8 = vcmp.eq.s32.totalorder %v3352_v32, 1 }
 0xaed   :  { %v1143_v39 = vpop.permute.xlu0 %1142 }
 0xaee   :  { %v1145_v52 = vsel %vm1139_vm4, %v1143_v39, %v3277_v53  ;;  %v1152_v62 = vsel %vm1139_vm4, %v1143_v39, 0.0  ;;  %v1108_v53 = vadd.f32 %v1099_v46, %v3172_v17 }
 0xaef   :  { %1153 = vst.msk [vmem:[#allocation2 + $0x6] sm:$0x3] %vm404_vm5, %v1152_v62  ;;  %2565 = vmatmul.mubr.msk.f32.vlgmr.msra.gmra.mrb[8].mxu1 %vm158_vm6, %v1145_v52 }
 0xaf0   :  { %2740 = vmatpush3.bf16.msra.mxu1 %v3026_v5  ;;  %2586 = vmatprep.mubr.msk.f32.mxu1 %vm2945_vm0, %v2944_v4  ;;  %v2343_v23 = vmul.f32 -1.442695, %v1108_v53 }
 0xaf1   :  { %2741 = vmatprep.subr.bf16.mxu1 %v2943_v0 }
 0xaf2   :  { %2867 = vpow2.f32 %v2343_v23 }
 0xaf4   :  { %2743 = vmatpush3.bf16.msra.mxu1 %v3046_v13 }
 0xaf5   :  { %2750 = vmatprep.subr.bf16.mxu1 %v2943_v0 }
 0xafc   :  { %v2868_v26 = vpop.eup %2867 }
 0xafd   :  { %v1112_v27 = vadd.f32 1.0, %v2868_v26 }
 0xaff   :  { %2869 = vrcp.f32 %v1112_v27  ;;  %v3386_v27 = vadd.f32 %v3103_v25, %v3169_v16 }
 0xb09   :  { %v2870_v29 = vpop.eup %2869 }
 0xb0a   :  { %v1127_v31 = vsub.f32 1.0, %v2870_v29  ;;  %v1133_v33 = vmul.f32 %v2870_v29, %v3305_v15 }
 0xb2e   :  { %v1130_v10 = vpop.permute.xlu0 %1129 }
 0xb2f   :  { %v1132_v35 = vmul.f32 %v1130_v10, %v1127_v31 }
 0xb31   :  { %v3355_v36 = vadd.f32 %v1133_v33, %v1132_v35 }
 0xb33   :  { %v3362_v17 = vsel %vm1150_vm8, %v3355_v36, %v3305_v15 }
 0xb34   :  { %2576 = vmatmul.mubr.msk.f32.vlgmr.msra.gmra.mrb[12].mxu0 %vm158_vm6, %v3362_v17 }
 0xb35   :  { %2746 = vmatpush3.bf16.msra.mxu0 %v3081_v20  ;;  %2597 = vmatprep.mubr.msk.f32.mxu0 %vm2945_vm0, %v2944_v4 }
 0xb36   :  { %2747 = vmatprep.subr.bf16.mxu0 %v2943_v0 }
 0xb39   :  { %2749 = vmatpush3.bf16.msra.mxu0 %v3089_v22 }
 0xb3a   :  { %2756 = vmatprep.subr.bf16.mxu0 %v2943_v0 }
 0xbc2   :  { %v1229_v37 = vpop.f32.mrb[8].mxu1 }
 0xbc3   :  { %v1240_v38 = vadd.f32 %v1229_v37, %v3101_v24  ;;  %v2566_v42 = vpop.f32.mrb[9].mxu1  ;;  %v1233_v46 = vadd.f32 %v1229_v37, %v3149_v1 }
 0xbc5   :  { %1242 = vrot.lane.b32.xlu1 %v1240_v38, %s2946_s22  ;;  %v2345_v48 = vmul.f32 -1.442695, %v1233_v46 }
 0xbc7   :  { %2871 = vpow2.f32 %v2345_v48 }
 0xbd1   :  { %v2872_v55 = vpop.eup %2871 }
 0xbd2   :  { %v1237_v30 = vadd.f32 1.0, %v2872_v55 }
 0xbd4   :  { %2873 = vrcp.f32 %v1237_v30 }
 0xbde   :  { %v2874_v57 = vpop.eup %2873 }
 0xbdf   :  { %v1252_v62 = vsub.f32 1.0, %v2874_v57 }
 0xc07   :  { %v1332_v15 = vpop.f32.mrb[12].mxu0 }
 0xc08   :  { %v1337_v43 = vrot.slane %v1332_v15, 2  ;;  %v2577_v45 = vpop.f32.mrb[13].mxu0  ;;  %v1355_v59 = vadd.f32 %v1332_v15, %v3138_v56 }
 0xc09   :  { %v1374_v45 = vrot.slane %v3362_v17, 2 }
 0xc0a   :  { %1338 = vrot.lane.b32.xlu1 %v1337_v43, %s2948_s1  ;;  %v1357_v61 = vrot.slane %v1355_v59, 2 }
 0xc37   :  { %v1243_v58 = vpop.permute.xlu1 %1242 }
 0xc38   :  { %v1245_v60 = vmul.f32 %v2874_v57, %v1243_v58 }
 0xc3a   :  { %1247 = vrot.lane.b32.xlu0 %v1245_v60, %s2946_s22 }
 0xc3e   :  { %1358 = vrot.lane.b32.xlu0 %v1357_v61, %s2949_s7 }
 0xc42   :  { %1258 = vrot.lane.b32.xlu0 %v1145_v52, %s2949_s7 }
 0xc7c   :  { %v1339_v63 = vpop.permute.xlu1 %1338 }
 0xc7d   :  { %v1341_v2 = vadd.f32 %v1339_v63, %v3116_v34  ;;  %v1348_v25 = vadd.f32 %v1339_v63, %v3386_v27 }
 0xc7f   :  { %v2347_v3 = vmul.f32 -1.442695, %v1341_v2  ;;  %v2348_v16 = vmul.f32 -1.442695, %v1348_v25 }
 0xc81   :  { %2875 = vpow2.f32 %v2347_v3 }
 0xc8b   :  { %v2876_v6 = vpop.eup %2875 }
 0xc8c   :  { %v1345_v8 = vadd.f32 1.0, %v2876_v6 }
 0xcac   :  { %v1248_v7 = vpop.permute.xlu0 %1247 }
 0xcad   :  { %v1250_v9 = vadd.f32 %v1248_v7, %v3149_v1 }
 0xcaf   :  { %2877 = vtanh.f32 %v1250_v9 }
 0xcb0   :  { %2879 = vrcp.f32 %v1345_v8  ;;  %v1359_v19 = vpop.permute.xlu0 %1358 }
 0xcb4   :  { %v1259_v52 = vpop.permute.xlu0 %1258 }
 0xcb5   :  { %v1261_v23 = vmul.f32 %v2874_v57, %v1259_v52 }
 0xcb9   :  { %v2878_v18 = vpop.eup %2877 }
 0xcba   :  { %1254 = vrot.lane.b32.xlu1 %v2878_v18, %s2948_s1  ;;  %v2880_v21 = vpop.eup %2879 }
 0xcbb   :  { %v1361_v39 = vmul.f32 %v2880_v21, %v1359_v19 }
 0xcbe   :  { %1363 = vrot.lane.b32.xlu1 %v1361_v39, %s2946_s22 }
 0xd2c   :  { %v1255_v53 = vpop.permute.xlu1 %1254 }
 0xd2d   :  { %v1257_v26 = vmul.f32 %v1255_v53, %v1252_v62 }
 0xd2f   :  { %v3388_v29 = vadd.f32 %v1261_v23, %v1257_v26 }
 0xd30   :  { %v1364_v31 = vpop.permute.xlu1 %1363 }
 0xd31   :  { %v1366_v10 = vadd.f32 %v1364_v31, %v3386_v27  ;;  %v3394_v33 = vsel %vm1150_vm8, %v3388_v29, %v1259_v52 }
 0xd32   :  { %1396 = vrot.lane.b32.xlu0 %v3394_v33, %s2948_s1 }
 0xd33   :  { %2881 = vtanh.f32 %v1366_v10 }
 0xd34   :  { %2883 = vpow2.f32 %v2348_v16 }
 0xd3d   :  { %v2882_v35 = vpop.eup %2881 }
 0xd3e   :  { %1370 = vrot.lane.b32.xlu1 %v2882_v35, %s2948_s1  ;;  %v2884_v37 = vpop.eup %2883 }
 0xd3f   :  { %v1352_v38 = vadd.f32 1.0, %v2884_v37 }
 0xd41   :  { %2885 = vrcp.f32 %v1352_v38 }
 0xd4b   :  { %v2886_v15 = vpop.eup %2885 }
 0xd4c   :  { %v1368_v43 = vsub.f32 1.0, %v2886_v15  ;;  %v1376_v48 = vmul.f32 %v2886_v15, %v1374_v45 }
 0xda4   :  { %v3400_v42 = vpop.permute.xlu0 %1396 }
 0xda5   :  { %2587 = vmatmul.mubr.msk.f32.vlgmr.msra.gmra.mrb[10].mxu1 %vm158_vm6, %v3400_v42 }
 0xda6   :  { %2752 = vmatpush3.bf16.msra.mxu1 %v3026_v5  ;;  %2608 = vmatprep.mubr.msk.f32.mxu1 %vm2945_vm0, %v2944_v4 }
 0xda7   :  { %2753 = vmatprep.subr.bf16.mxu1 %v2943_v0 }
 0xdaa   :  { %2755 = vmatpush3.bf16.msra.mxu1 %v3046_v13 }
 0xdab   :  { %2762 = vmatprep.subr.bf16.mxu1 %v2943_v0 }
 0xdb0   :  { %v1371_v46 = vpop.permute.xlu1 %1370 }
 0xdb1   :  { %v1373_v55 = vmul.f32 %v1371_v46, %v1368_v43 }
 0xdb3   :  { %v3411_v30 = vadd.f32 %v1376_v48, %v1373_v55  ;;  %v1499_v48 = vrot.slane %v3394_v33, 6 }
 0xdb5   :  { %v1380_v57 = vrot.slane %v3411_v30, 6 }
 0xdb7   :  { %v3419_v58 = vsel %vm1139_vm4, %v1380_v57, %v3362_v17 }
 0xdb8   :  { %2598 = vmatmul.mubr.msk.f32.vlgmr.msra.gmra.mrb[14].mxu0 %vm158_vm6, %v3419_v58 }
 0xdb9   :  { %2758 = vmatpush3.bf16.msra.mxu0 %v3081_v20  ;;  %2619 = vmatprep.mubr.msk.f32.mxu0 %vm2945_vm0, %v2944_v4 }
 0xdba   :  { %2759 = vmatprep.subr.bf16.mxu0 %v2943_v0 }
 0xdbd   :  { %2761 = vmatpush3.bf16.msra.mxu0 %v3089_v22 }
 0xdbe   :  { %2768 = vmatprep.subr.bf16.mxu0 %v2943_v0 }
 0xe78   :  { %v1466_v59 = vpop.f32.mrb[10].mxu1 }
 0xe79   :  { %v1480_v60 = vadd.f32 %v1466_v59, %v3101_v24  ;;  %v2588_v61 = vpop.f32.mrb[11].mxu1  ;;  %v1471_v8 = vrot.slane %v1466_v59, 6 }
 0xe7b   :  { %v1482_v17 = vrot.slane %v1480_v60, 6  ;;  %v1473_v9 = vadd.f32 %v1471_v8, %v3149_v1 }
 0xe7d   :  { %1483 = vrot.lane.b32.xlu0 %v1482_v17, %s2946_s22  ;;  %v2350_v18 = vmul.f32 -1.442695, %v1473_v9 }
 0xe7f   :  { %2887 = vpow2.f32 %v2350_v18  ;;  %v1614_v18 = vrot.slane %v3419_v58, 4 }
 0xe89   :  { %v2888_v19 = vpop.eup %2887 }
 0xe8a   :  { %v1477_v21 = vadd.f32 1.0, %v2888_v19 }
 0xe8b   :  { %v1572_v63 = vpop.f32.mrb[14].mxu0 }
 0xe8c   :  { %v1577_v2 = vrot.slane %v1572_v63, 4  ;;  %v1595_v3 = vadd.f32 %v1572_v63, %v3138_v56  ;;  %v2599_v6 = vpop.f32.mrb[15].mxu0  ;;  %2889 = vrcp.f32 %v1477_v21 }
 0xe8e   :  { %1578 = vrot.lane.b32.xlu1 %v1577_v2, %s2948_s1  ;;  %v1597_v7 = vrot.slane %v1595_v3, 4 }
 0xe92   :  { %1598 = vrot.lane.b32.xlu1 %v1597_v7, %s2949_s7 }
 0xe96   :  { %v2890_v39 = vpop.eup %2889 }
 0xe97   :  { %v1493_v55 = vsub.f32 1.0, %v2890_v39  ;;  %v1501_v61 = vmul.f32 %v2890_v39, %v1499_v48 }
 0xeef   :  { %v1484_v52 = vpop.permute.xlu0 %1483 }
 0xef0   :  { %v1486_v62 = vmul.f32 %v2890_v39, %v1484_v52 }
 0xef2   :  { %1488 = vrot.lane.b32.xlu0 %v1486_v62, %s2946_s22 }
 0xf00   :  { %v1579_v53 = vpop.permute.xlu1 %1578 }
 0xf01   :  { %v1581_v23 = vadd.f32 %v1579_v53, %v3116_v34  ;;  %v1588_v2 = vadd.f32 %v1579_v53, %v3386_v27 }
 0xf03   :  { %v2352_v26 = vmul.f32 -1.442695, %v1581_v23  ;;  %v2353_v3 = vmul.f32 -1.442695, %v1588_v2 }
 0xf04   :  { %v1599_v25 = vpop.permute.xlu1 %1598 }
 0xf05   :  { %2891 = vpow2.f32 %v2352_v26 }
 0xf0f   :  { %v2892_v31 = vpop.eup %2891 }
 0xf10   :  { %v1585_v10 = vadd.f32 1.0, %v2892_v31 }
 0xf12   :  { %2893 = vrcp.f32 %v1585_v10 }
 0xf1c   :  { %v2894_v35 = vpop.eup %2893 }
 0xf1d   :  { %v1601_v16 = vmul.f32 %v2894_v35, %v1599_v25 }
 0xf1f   :  { %1603 = vrot.lane.b32.xlu0 %v1601_v16, %s2946_s22 }
 0xf64   :  { %v1489_v37 = vpop.permute.xlu0 %1488 }
 0xf65   :  { %v1491_v38 = vadd.f32 %v1489_v37, %v3149_v1 }
 0xf67   :  { %2895 = vtanh.f32 %v1491_v38 }
 0xf71   :  { %v2896_v15 = vpop.eup %2895 }
 0xf72   :  { %1495 = vrot.lane.b32.xlu1 %v2896_v15, %s2948_s1 }
 0xf91   :  { %v1604_v43 = vpop.permute.xlu0 %1603 }
 0xf92   :  { %v1606_v45 = vadd.f32 %v1604_v43, %v3386_v27 }
 0xf94   :  { %2897 = vtanh.f32 %v1606_v45 }
 0xf95   :  { %2899 = vpow2.f32 %v2353_v3 }
 0xf9e   :  { %v2898_v46 = vpop.eup %2897 }
 0xf9f   :  { %1610 = vrot.lane.b32.xlu1 %v2898_v46, %s2948_s1  ;;  %v2900_v6 = vpop.eup %2899 }
 0xfa0   :  { %v1592_v7 = vadd.f32 1.0, %v2900_v6 }
 0xfa2   :  { %2901 = vrcp.f32 %v1592_v7 }
 0xfac   :  { %v2902_v8 = vpop.eup %2901 }
 0xfad   :  { %v1608_v9 = vsub.f32 1.0, %v2902_v8  ;;  %v1616_v19 = vmul.f32 %v2902_v8, %v1614_v18 }
 0xfe4   :  { %v1496_v59 = vpop.permute.xlu1 %1495 }
 0xfe5   :  { %v1498_v60 = vmul.f32 %v1496_v59, %v1493_v55 }
 0xfe7   :  { %v1502_v17 = vadd.f32 %v1501_v61, %v1498_v60 }
 0xfe9   :  { %v1619_v63 = vrot.slane %v1502_v17, 2 }
 0xfeb   :  { %1620 = vrot.lane.b32.xlu0 %v1619_v63, %s2948_s1 }
0x1011   :  { %v1611_v33 = vpop.permute.xlu1 %1610 }
0x1012   :  { %v1613_v21 = vmul.f32 %v1611_v33, %v1608_v9 }
0x1014   :  { %v3446_v52 = vadd.f32 %v1616_v19, %v1613_v21 }
0x1016   :  { %v1626_v39 = vrot.slane %v3446_v52, 4  ;;  %v2115_v52 = vld [vmem:[%s3645_s8 + $0x18] sm:$0xff] }
0x1018   :  { %v3454_v62 = vsel %vm890_vm14, %v1626_v39, %v3419_v58 }
0x1019   :  { %2620 = vmatmul.mubr.msk.f32.vlgmr.msra.gmra.mrb[16].mxu0 %vm158_vm6, %v3454_v62 }
0x101a   :  { %2770 = vmatpush3.bf16.msra.mxu0 %v3081_v20  ;;  %2641 = vmatprep.mubr.msk.f32.mxu0 %vm2945_vm0, %v2944_v4 }
0x101b   :  { %2771 = vmatprep.subr.bf16.mxu0 %v2943_v0 }
0x101e   :  { %2773 = vmatpush3.bf16.msra.mxu0 %v3089_v22 }
0x105d   :  { %v3463_v53 = vpop.permute.xlu0 %1620 }
0x105e   :  { %v3469_v58 = vsel %vm901_vm15, %v3463_v53, %v3400_v42 }
0x105f   :  { %2609 = vmatmul.mubr.msk.f32.vlgmr.msra.gmra.mrb[12].mxu1 %vm158_vm6, %v3469_v58  ;;  %v1739_v17 = vrot.slane %v3469_v58, 4 }
0x1060   :  { %2764 = vmatpush3.bf16.msra.mxu1 %v3026_v5  ;;  %2630 = vmatprep.mubr.msk.f32.mxu1 %vm2945_vm0, %v2944_v4  ;;  %vm410_vm0 = vcmask 517376  }
0x1061   :  { %2765 = vmatprep.subr.bf16.mxu1 %v2943_v0 }
0x1064   :  { %2767 = vmatpush3.bf16.msra.mxu1 %v3046_v13 }
0x10ec   :  { %v1814_v20 = vpop.f32.mrb[16].mxu0 }
0x10ed   :  { %v1819_v22 = vrot.slane %v1814_v20, 6  ;;  %v2621_v23 = vpop.f32.mrb[17].mxu0  ;;  %v1837_v10 = vadd.f32 %v1814_v20, %v3138_v56 }
0x10ef   :  { %1820 = vrot.lane.b32.xlu1 %v1819_v22, %s2948_s1  ;;  %v1839_v5 = vrot.slane %v1837_v10, 6 }
0x1132   :  { %v1706_v26 = vpop.f32.mrb[12].mxu1 }
0x1133   :  { %v1720_v42 = vadd.f32 %v1706_v26, %v3101_v24  ;;  %v2610_v31 = vpop.f32.mrb[13].mxu1  ;;  %v1711_v0 = vrot.slane %v1706_v26, 4 }
0x1135   :  { %v1722_v35 = vrot.slane %v1720_v42, 4  ;;  %v1713_v4 = vadd.f32 %v1711_v0, %v3149_v1 }
0x1137   :  { %1723 = vrot.lane.b32.xlu0 %v1722_v35, %s2946_s22  ;;  %v2355_v25 = vmul.f32 -1.442695, %v1713_v4  ;;  %v1856_v35 = vrot.slane %v3454_v62, 6 }
0x1139   :  { %2903 = vpow2.f32 %v2355_v25 }
0x113b   :  { %1840 = vrot.lane.b32.xlu0 %v1839_v5, %s2949_s7 }
0x1143   :  { %v2904_v38 = vpop.eup %2903 }
0x1144   :  { %v1717_v15 = vadd.f32 1.0, %v2904_v38 }
0x1161   :  { %v1821_v13 = vpop.permute.xlu1 %1820 }
0x1162   :  { %v1823_v16 = vadd.f32 %v1821_v13, %v3116_v34  ;;  %v1830_v9 = vadd.f32 %v1821_v13, %v3386_v27 }
0x1164   :  { %v2357_v37 = vmul.f32 -1.442695, %v1823_v16  ;;  %v2358_v18 = vmul.f32 -1.442695, %v1830_v9 }
0x1166   :  { %2905 = vpow2.f32 %v2357_v37 }
0x1167   :  { %2907 = vrcp.f32 %v1717_v15 }
0x1170   :  { %v2906_v43 = vpop.eup %2905 }
0x1171   :  { %v1827_v45 = vadd.f32 1.0, %v2906_v43  ;;  %v2908_v46 = vpop.eup %2907 }
0x1172   :  { %v1733_v20 = vsub.f32 1.0, %v2908_v46 }
0x1173   :  { %2909 = vrcp.f32 %v1827_v45 }
0x117d   :  { %v2910_v59 = vpop.eup %2909 }
0x11a9   :  { %v1724_v48 = vpop.permute.xlu0 %1723 }
0x11aa   :  { %v1726_v55 = vmul.f32 %v2908_v46, %v1724_v48 }
0x11ac   :  { %1728 = vrot.lane.b32.xlu1 %v1726_v55, %s2946_s22 }
0x11ad   :  { %v1841_v60 = vpop.permute.xlu0 %1840 }
0x11ae   :  { %v1843_v61 = vmul.f32 %v2910_v59, %v1841_v60 }
0x11b0   :  { %1845 = vrot.lane.b32.xlu0 %v1843_v61, %s2946_s22 }
0x11b4   :  { %1740 = vrot.lane.b32.xlu0 %v1739_v17, %s2949_s7 }
0x121e   :  { %v1729_v63 = vpop.permute.xlu1 %1728 }
0x121f   :  { %v1731_v2 = vadd.f32 %v1729_v63, %v3149_v1 }
0x1221   :  { %2911 = vtanh.f32 %v1731_v2 }
0x1222   :  { %v1846_v3 = vpop.permute.xlu0 %1845 }
0x1223   :  { %v1848_v6 = vadd.f32 %v1846_v3, %v3386_v27 }
0x1225   :  { %2913 = vtanh.f32 %v1848_v6  ;;  %v1389_v6 = vsel %vm1139_vm4, %v1380_v57, 0.0 }
0x1226   :  { %2915 = vpow2.f32 %v2358_v18  ;;  %v1741_v21 = vpop.permute.xlu0 %1740 }
0x1227   :  { %v1743_v26 = vmul.f32 %v2908_v46, %v1741_v21  ;;  %v1629_v21 = vsel %vm901_vm15, %v3463_v53, 0.0  ;;  %v2112_v53 = vld [vmem:[%s3645_s8] sm:$0xff] }
0x122b   :  { %v2912_v7 = vpop.eup %2911 }
0x122c   :  { %1735 = vrot.lane.b32.xlu1 %v2912_v7, %s2948_s1 }
0x122f   :  { %v2914_v8 = vpop.eup %2913 }
0x1230   :  { %1852 = vrot.lane.b32.xlu1 %v2914_v8, %s2948_s1  ;;  %v2916_v33 = vpop.eup %2915 }
0x1231   :  { %v1834_v19 = vadd.f32 1.0, %v2916_v33 }
0x1233   :  { %2917 = vrcp.f32 %v1834_v19 }
0x123d   :  { %v2918_v22 = vpop.eup %2917 }
0x123e   :  { %v1850_v10 = vsub.f32 1.0, %v2918_v22  ;;  %v1858_v4 = vmul.f32 %v2918_v22, %v1856_v35 }
0x129e   :  { %v1736_v23 = vpop.permute.xlu1 %1735 }
0x129f   :  { %v1738_v42 = vmul.f32 %v1736_v23, %v1733_v20 }
0x12a1   :  { %v1744_v31 = vadd.f32 %v1743_v26, %v1738_v42 }
0x12a2   :  { %v1853_v5 = vpop.permute.xlu1 %1852 }
0x12a3   :  { %v1861_v0 = vrot.slane %v1744_v31, 4  ;;  %v1855_v25 = vmul.f32 %v1853_v5, %v1850_v10  ;;  %v2113_v10 = vld [vmem:[%s3645_s8 + $0x8] sm:$0xff]  ;;  %v1154_v5 = vsel %vm1150_vm8, %v3355_v36, 0.0  ;;  %v2114_v36 = vld [vmem:[%s3645_s8 + $0x10] sm:$0xff] }
0x12a4   :  { %v2774_v35 = vpack.c.bf16 %v2113_v10, %v2112_v53  ;;  %v2778_v47 = vpack.c.bf16 %v2115_v52, %v2114_v36 }
0x12a5   :  { %v1859_v13 = vadd.f32 %v1858_v4, %v1855_v25  ;;  %1862 = vrot.lane.b32.xlu0 %v1861_v0, %s2948_s1  ;;  %v1631_v0 = vsel %vm890_vm14, %v1626_v39, 0.0  ;;  %v2117_v39 = vld [vmem:[%s3645_s8 + $0x28] sm:$0xff] }
0x12a6   :  { %2775 = vmatprep.subr.bf16.mxu1 %v2774_v35 }
0x12a7   :  { %v1867_v16 = vrot.slane %v1859_v13, 2 }
0x12a9   :  { %v3499_v37 = vsel %vm637_vm10, %v1867_v16, %v3454_v62  ;;  %v1872_v7 = vsel %vm637_vm10, %v1867_v16, 0.0  ;;  %v2118_v16 = vld [vmem:[%s3645_s8 + $0x30] sm:$0xff] }
0x12aa   :  { %2642 = vmatmul.mubr.msk.f32.vlgmr.msra.gmra.mrb[18].mxu0 %vm158_vm6, %v3499_v37 }
0x1317   :  { %v3503_v38 = vpop.permute.xlu0 %1862 }
0x1318   :  { %v1865_v15 = vsel %vm648_vm11, %v3503_v38, %v3469_v58 }
0x1319   :  { %2631 = vmatmul.mubr.msk.f32.vlgmr.msra.gmra.mrb[14].mxu1 %vm158_vm6, %v1865_v15 }
0x131a   :  { %2777 = vmatpush3.bf16.msra.mxu1 %v2774_v35 }
0x131b   :  { %2779 = vmatprep.subr.bf16.mxu1 %v2778_v47 }
0x131e   :  { %2781 = vmatpush3.bf16.msra.mxu1 %v2778_v47 }
0x137d   :  { %v2055_v43 = vpop.f32.mrb[18].mxu0 }
0x137e   :  { %2060 = vrot.lane.b32.xlu1 %v2055_v43, %s2948_s1  ;;  %v2643_v45 = vpop.f32.mrb[19].mxu0  ;;  %v2077_v46 = vadd.f32 %v2055_v43, %v3138_v56 }
0x1382   :  { %2079 = vrot.lane.b32.xlu1 %v2077_v46, %s2949_s7 }
0x13ec   :  { %v1947_v62 = vpop.f32.mrb[14].mxu1 }
0x13ed   :  { %v1961_v48 = vadd.f32 %v1947_v62, %v3101_v24  ;;  %v2632_v55 = vpop.f32.mrb[15].mxu1  ;;  %v1980_v24 = vrot.slane %v1865_v15, 2  ;;  %v2119_v15 = vld [vmem:[%s3645_s8 + $0x38] sm:$0xff] }
0x13ee   :  { %v2786_v45 = vpack.c.bf16 %v2119_v15, %v2118_v16 }
0x13ef   :  { %v1963_v59 = vrot.slane %v1961_v48, 2 }
0x13f0   :  { %v3514_v60 = vpop.permute.xlu1 %2060 }
0x13f1   :  { %v2063_v58 = vadd.f32 %v3514_v60, %v3116_v34  ;;  %1964 = vrot.lane.b32.xlu0 %v1963_v59, %s2946_s22  ;;  %v908_v34 = vsel %vm901_vm15, %v903_v14, 0.0  ;;  %v2070_v50 = vadd.f32 %v3514_v60, %v3386_v27 }
0x13f3   :  { %v2362_v61 = vmul.f32 -1.442695, %v2063_v58 }
0x13f4   :  { %v2080_v2 = vpop.permute.xlu1 %2079 }
0x13f5   :  { %2919 = vpow2.f32 %v2362_v61 }
0x13ff   :  { %v2920_v17 = vpop.eup %2919 }
0x1400   :  { %v2067_v63 = vadd.f32 1.0, %v2920_v17 }
0x1402   :  { %2921 = vrcp.f32 %v2067_v63 }
0x140c   :  { %v2922_v56 = vpop.eup %2921 }
0x140d   :  { %v2082_v3 = vmul.f32 %v2922_v56, %v2080_v2  ;;  %v2211_v2 = vld [vmem:[%s3646_s10] sm:$0xff] }
0x140f   :  { %2084 = vrot.lane.b32.xlu1 %v2082_v3, %s2946_s22  ;;  %v2212_v3 = vld [vmem:[%s3646_s10 + $0x8] sm:$0xff] }
0x1413   :  { %1981 = vrot.lane.b32.xlu1 %v1980_v24, %s2949_s7 }
0x1417   :  { %407 = vrot.lane.b32.xlu1 %v3184_v44, %s2949_s7  ;;  %v1952_v44 = vrot.slane %v1947_v62, 2 }
0x1419   :  { %v1954_v12 = vadd.f32 %v1952_v44, %v3149_v1 }
0x141b   :  { %910 = vrot.lane.b32.xlu1 %v908_v34, %s2949_s7  ;;  %v2360_v8 = vmul.f32 -1.442695, %v1954_v12  ;;  %v2790_v34 = vpack.c.bf16 %v2212_v3, %v2211_v2 }
0x141d   :  { %2923 = vpow2.f32 %v2360_v8  ;;  %2791 = vmatprep.subr.bf16.mxu0 %v2790_v34 }
0x141e   :  { %2793 = vmatpush3.bf16.msra.mxu0 %v2790_v34 }
0x141f   :  { %1391 = vrot.lane.b32.xlu1 %v1389_v6, %s2949_s7  ;;  %v1870_v6 = vsel %vm648_vm11, %v3503_v38, 0.0 }
0x1423   :  { %1874 = vrot.lane.b32.xlu1 %v1872_v7, %s2949_s7  ;;  %v1383_v7 = vsel %vm1150_vm8, %v3388_v29, 0.0 }
0x1427   :  { %v2924_v14 = vpop.eup %2923 }
0x1428   :  { %v1958_v9 = vadd.f32 1.0, %v2924_v14  ;;  %v2213_v14 = vld [vmem:[%s3646_s10 + $0x10] sm:$0xff] }
0x142a   :  { %2925 = vrcp.f32 %v1958_v9  ;;  %v2794_v9 = vpack.c.bf16 %v2214_v41, %v2213_v14 }
0x142c   :  { %2795 = vmatprep.subr.bf16.mxu0 %v2794_v9 }
0x142d   :  { %2797 = vmatpush3.bf16.msra.mxu0 %v2794_v9 }
0x1434   :  { %v2926_v18 = vpop.eup %2925 }
0x1435   :  { %v1974_v43 = vsub.f32 1.0, %v2926_v18 }
0x1463   :  { %v1965_v30 = vpop.permute.xlu0 %1964 }
0x1464   :  { %v1967_v33 = vmul.f32 %v2926_v18, %v1965_v30  ;;  %v2364_v30 = vld [vmem:[%s3648_s9] ss:$0 sm:$0xff] }
0x1466   :  { %1969 = vrot.lane.b32.xlu0 %v1967_v33, %s2946_s22 }
0x1481   :  { %v2085_v40 = vpop.permute.xlu1 %2084 }
0x1482   :  { %v2087_v42 = vadd.f32 %v2085_v40, %v3386_v27  ;;  %v2116_v27 = vld [vmem:[%s3645_s8 + $0x20] sm:$0xff] }
0x1483   :  { %v2782_v13 = vpack.c.bf16 %v2117_v39, %v2116_v27 }
0x1485   :  { %v1982_v57 = vpop.permute.xlu1 %1981  ;;  %2783 = vmatprep.subr.bf16.mxu1 %v2782_v13 }
0x1486   :  { %2785 = vmatpush3.bf16.msra.mxu1 %v2782_v13  ;;  %v1984_v48 = vmul.f32 %v2926_v18, %v1982_v57  ;;  %v17_v18 = vstv %s3647_s11 }
0x1487   :  { %2787 = vmatprep.subr.bf16.mxu1 %v2786_v45  ;;  %18 = vst [vmem:[#allocation3] sm:$0x1] %v17_v18 }
0x1489   :  { %v408_v28 = vpop.permute.xlu1 %407 }
0x148a   :  { %411 = vst.msk [vmem:[#allocation2 + $0xe] sm:$0x3] %vm410_vm0, %v408_v28  ;;  %2789 = vmatpush3.bf16.msra.mxu1 %v2786_v45 }
0x148d   :  { %v911_v19 = vpop.permute.xlu1 %910 }
0x148e   :  { %913 = vst.msk [vmem:[#allocation2 + $0xa] sm:$0x3] %vm410_vm0, %v911_v19 }
0x148f   :  { %1630 = vst.msk [vmem:[#allocation2 + $0xa] sm:$0x3] %vm404_vm5, %v1629_v21 }
0x1491   :  { %v1392_v20 = vpop.permute.xlu1 %1391 }
0x1492   :  { %1394 = vst.msk [vmem:[#allocation2 + $0x6] sm:$0x3] %vm410_vm0, %v1392_v20  ;;  %v2367_v20 = vld [vmem:[#allocation3] ss:$0 sm:$0xff] }
0x1495   :  { %v1875_v22 = vpop.permute.xlu1 %1874 }
0x1496   :  { %1877 = vst.msk [vmem:[#allocation2 + $0x2] sm:$0x3] %vm410_vm0, %v1875_v22 }
0x14d8   :  { %v1970_v23 = vpop.permute.xlu0 %1969 }
0x14d9   :  { %v1972_v26 = vadd.f32 %v1970_v23, %v3149_v1  ;;  %v655_v1 = vsel %vm648_vm11, %v650_v51, 0.0  ;;  %v2363_v51 = vmul.f32 -1.442695, %v2070_v50 }
0x14db   :  { %2927 = vtanh.f32 %v1972_v26 }
0x14dc   :  { %2929 = vtanh.f32 %v2087_v42 }
0x14dd   :  { %2931 = vpow2.f32 %v2363_v51 }
0x14e5   :  { %v2928_v31 = vpop.eup %2927 }
0x14e6   :  { %1976 = vrot.lane.b32.xlu0 %v2928_v31, %s2948_s1  ;;  %v2930_v11 = vpop.eup %2929 }
0x14e7   :  { %v2932_v4 = vpop.eup %2931 }
0x14e8   :  { %v2074_v25 = vadd.f32 1.0, %v2932_v4 }
0x14ea   :  { %2091 = vrot.lane.b32.xlu0 %v2930_v11, %s2948_s1  ;;  %2933 = vrcp.f32 %v2074_v25 }
0x14ee   :  { %657 = vrot.lane.b32.xlu0 %v655_v1, %s2949_s7 }
0x14f2   :  { %1156 = vrot.lane.b32.xlu0 %v1154_v5, %s2949_s7 }
0x14f4   :  { %v2934_v46 = vpop.eup %2933 }
0x14f5   :  { %v2089_v60 = vsub.f32 1.0, %v2934_v46  ;;  %v2095_v17 = vmul.f32 %v2934_v46, %v3499_v37 }
0x14f6   :  { %1633 = vrot.lane.b32.xlu0 %v1631_v0, %s2949_s7 }
0x1558   :  { %v1977_v62 = vpop.permute.xlu0 %1976 }
0x1559   :  { %v1979_v55 = vmul.f32 %v1977_v62, %v1974_v43 }
0x155b   :  { %v1985_v59 = vadd.f32 %v1984_v48, %v1979_v55 }
0x155c   :  { %v2092_v58 = vpop.permute.xlu0 %2091 }
0x155d   :  { %v2098_v61 = vrot.slane %v1985_v59, 6  ;;  %v2094_v63 = vmul.f32 %v2092_v58, %v2089_v60 }
0x155f   :  { %v2096_v56 = vadd.f32 %v2095_v17, %v2094_v63  ;;  %2099 = vrot.lane.b32.xlu0 %v2098_v61, %s2948_s1 }
0x1560   :  { %v658_v24 = vpop.permute.xlu0 %657 }
0x1561   :  { %660 = vst.msk [vmem:[#allocation2 + $0xc] sm:$0x3] %vm410_vm0, %v658_v24  ;;  %v2104_v37 = vsel %vm389_vm3, %v2096_v56, 0.0  ;;  %vm2127_vm3 = vcmask 523264  }
0x1562   :  { %1871 = vst.msk [vmem:[#allocation2 + $0xc] sm:$0x3] %vm404_vm5, %v1870_v6  ;;  %2106 = vrot.lane.b32.xlu1 %v2104_v37, %s2949_s7 }
0x1563   :  { %1385 = vrot.lane.b32.xlu0 %v1383_v7, %s2948_s1 }
0x1564   :  { %v1157_v44 = vpop.permute.xlu0 %1156 }
0x1565   :  { %1159 = vst.msk [vmem:[#allocation2 + $0x8] sm:$0x3] %vm410_vm0, %v1157_v44 }
0x1568   :  { %v1634_v49 = vpop.permute.xlu0 %1633 }
0x1569   :  { %1636 = vst.msk [vmem:[#allocation2 + $0x4] sm:$0x3] %vm410_vm0, %v1634_v49 }
0x15d1   :  { %v2100_v54 = vpop.permute.xlu0 %2099 }
0x15d2   :  { %v2102_v38 = vsel %vm395_vm7, %v2100_v54, 0.0 }
0x15d3   :  { %2103 = vst.msk [vmem:[#allocation2 + $0xe] sm:$0x3] %vm404_vm5, %v2102_v38 }
0x15d4   :  { %v2107_v12 = vpop.permute.xlu1 %2106 }
0x15d5   :  { %2109 = vst.msk [vmem:[#allocation2] sm:$0x3] %vm410_vm0, %v2107_v12  ;;  %v1386_v32 = vpop.permute.xlu0 %1385 }
0x15d6   :  { %1388 = vst.msk [vmem:[#allocation2 + $0x8] sm:$0x3] %vm404_vm5, %v1386_v32  ;;  %vm2315_vm5 = vcmask 7168  }
0x15dc   :  { %v2110_v29 = vld [vmem:[#allocation2] sm:$0xff] }
0x15dd   :  { %2660 = vmatprep.mubr.msk.f32.mxu1 %vm2127_vm3, %v2110_v29  ;;  %v2111_v8 = vld [vmem:[#allocation2 + $0x8] sm:$0xff] }
0x15de   :  { %2661 = vmatmul.mubr.msk.f32.vlgmr.msra.gmra.mrb[16].mxu1 %vm2127_vm3, %v2111_v8 }
0x16b1   :  { %v2662_v33 = vpop.f32.mrb[16].mxu1 }
0x16b2   :  { %v2206_v40 = vadd.f32 %v2662_v33, %v2364_v30  ;;  %v2200_v57 = vpop.f32.mrb[17].mxu1 }
0x16b3   :  { %v2201_v28 = vadd.f32 %v2364_v30, %v2200_v57 }
0x16b4   :  { %v2210_v21 = vmax.f32 %v2206_v40, 0.0 }
0x16b5   :  { %v2209_v19 = vmax.f32 %v2201_v28, 0.0 }
0x16b7   :  { %2671 = vmatprep.mubr.msk.f32.mxu0 %vm158_vm6, %v2209_v19 }
0x16b8   :  { %2672 = vmatmul.mubr.msk.f32.vlgmr.msra.gmra.mrb[20].mxu0 %vm158_vm6, %v2210_v21 }
0x178b   :  { %v2673_v22 = vpop.f32.mrb[20].mxu0 }
0x178c   :  { %v2300_v23 = vadd.f32 %v2673_v22, %v2367_v20  ;;  %v2294_v26 = vpop.f32.mrb[21].mxu0 }
0x178d   :  { %v2295_v42 = vadd.f32 %v2367_v20, %v2294_v26 }
0x178e   :  { %v2371_v31 = vmul.f32 -1.442695, %v2300_v23 }
0x178f   :  { %v2370_v11 = vmul.f32 -1.442695, %v2295_v42 }
0x1790   :  { %2935 = vpow2.f32 %v2371_v31 }
0x1791   :  { %2937 = vpow2.f32 %v2370_v11 }
0x179a   :  { %v2936_v53 = vpop.eup %2935 }
0x179b   :  { %v2938_v10 = vpop.eup %2937  ;;  %v2310_v35 = vadd.f32 1.0, %v2936_v53 }
0x179c   :  { %v2309_v1 = vadd.f32 1.0, %v2938_v10 }
0x179d   :  { %2939 = vrcp.f32 %v2310_v35 }
0x179e   :  { %2941 = vrcp.f32 %v2309_v1 }
0x17a7   :  { %v2940_v5 = vpop.eup %2939 }
0x17a8   :  { %v2942_v0 = vpop.eup %2941  ;;  %2317 = vst.msk [vmem:[%s3649_s12 + $0x8] sm:$0xff] %vm2315_vm5, %v2940_v5 }
0x17a9   :  { %2316 = vst.msk [vmem:[%s3649_s12] sm:$0xff] %vm2315_vm5, %v2942_v0 }

</bundles_post_ra>
